<compile_context>
chip_gen: v6e
topology: v6e:2x2x1
jax: 0.10.0
libtpu: 0.0.40
codegen_flags: <defaults>
</compile_context>

<pallas_src>
import functools

import jax
import jax.numpy as jnp
from jax.experimental import pallas as pl
from jax.experimental.pallas import tpu as pltpu


def mhsa_kernel(x_ref, wqkv_ref, bqkv_ref, wproj_ref, bproj_ref, o_ref, *,
                num_heads: int, head_dim: int, group: int, tokens: int,
                scale: float, matmul_dtype):
    f32 = jnp.float32
    C = num_heads * head_dim
    N = tokens

    xT = x_ref[0]                                            # (C, G*N) feature-major slab

    # --- fused QKV projection on the whole lane-dense slab (MXU) ---
    qkvT = jnp.dot(wqkv_ref[...], xT, preferred_element_type=f32)
    qkvT = qkvT + bqkv_ref[...]                              # (3C, G*N), f32

    # Attention scale on the Q rows (hides under MXU slack; weights untouched).
    q_slab = qkvT[0:C, :] * scale                            # (C, G*N)
    k_slab = qkvT[C:2 * C, :]                                # (C, G*N) -- already "K^T"
    v_slab = qkvT[2 * C:3 * C, :]                            # (C, G*N)

    def to_mm(a):
        return a if matmul_dtype is None else a.astype(matmul_dtype)

    # --- per batch item in the group: attention batched over heads ---
    ctx_parts = []
    for g in range(group):                                   # static unroll, group small
        c0 = g * N
        q = q_slab[:, c0:c0 + N].reshape(num_heads, head_dim, N)
        k = k_slab[:, c0:c0 + N].reshape(num_heads, head_dim, N)
        v = v_slab[:, c0:c0 + N].reshape(num_heads, head_dim, N)

        # scores[h, i, j] = sum_d q[h, d, i] * k[h, d, j]   (no explicit q.T)
        s = jnp.einsum("hdi,hdj->hij", to_mm(q), to_mm(k),
                       preferred_element_type=f32)           # (nh, N, N)
        s = s - jnp.max(s, axis=-1, keepdims=True)
        p = jnp.exp(s)
        l = jnp.sum(p, axis=-1, keepdims=True)               # (nh, N, 1)
        p = p * pl.reciprocal(l, approx=True)                # EUP reciprocal, no VALU div

        # ctx[h, d, i] = sum_j p[h, i, j] * v[h, d, j]
        ctx = jnp.einsum("hij,hdj->hdi", to_mm(p), to_mm(v),
                         preferred_element_type=f32)         # (nh, hd, N)
        ctx_parts.append(ctx.reshape(C, N))

    ctxT = ctx_parts[0] if group == 1 else jnp.concatenate(ctx_parts, axis=-1)  # (C, G*N)

    # --- output projection on the whole slab (MXU), lane-dense store ---
    outT = jnp.dot(wproj_ref[...], ctxT.astype(wproj_ref.dtype),
                   preferred_element_type=f32)
    outT = outT + bproj_ref[...]                             # (C, G*N)
    o_ref[0] = outT.astype(o_ref.dtype)


def mhsa(x, wqkv, bqkv, wproj, bproj, *, head_dim: int, compute_dtype=None,
         out_dtype=None, lane_target: int = 128):
    """x: (B, C, H, W).  Weights in torch nn.Linear layout: (out, in).

    compute_dtype: optionally cast x / weights / attention-matmul operands
    (e.g. jnp.bfloat16) for full-rate MXU matmuls; softmax + accumulation
    stay float32.  out_dtype: optionally emit the output in a narrower dtype.
    """
    B, C, H, W = x.shape
    N = H * W
    assert C % head_dim == 0, "dim must be divisible by head_dim"
    # The per-head sublane reshape assumes head_dim is sublane-tile aligned
    # (f32 sublane tile = 8 rows); true for FastViT (head_dim = 32) and here.
    assert head_dim % 8 == 0, "head_dim must be a multiple of 8 for this kernel"
    num_heads = C // head_dim
    scale = float(head_dim) ** -0.5

    # Pack G batch items per grid step so the lane (token) axis >= lane_target.
    # (With B=2, N=64 this gives G=2 -> 128-lane tiles and a single grid step;
    #  lane density is the bigger lever than 2-step TC splitting at this size.)
    G = 1
    if N < lane_target:
        G = min(B, -(-lane_target // N))            # ceil(lane_target / N)
        while G > 1 and B % G != 0:                 # keep B divisible by G
            G -= 1
    BG = B // G
    GN = G * N

    # NCHW -> (BG, C, G*N) feature-major slabs (group items contiguous along lanes).
    xf = x.reshape(B, C, N)
    if G > 1:
        xf = xf.reshape(BG, G, C, N).transpose(0, 2, 1, 3).reshape(BG, C, GN)

    if compute_dtype is not None:
        xf = xf.astype(compute_dtype)
        wqkv = wqkv.astype(compute_dtype)
        wproj = wproj.astype(compute_dtype)
    bqkv_2d = bqkv.reshape(3 * C, 1).astype(jnp.float32)
    bproj_2d = bproj.reshape(C, 1).astype(jnp.float32)

    kernel = functools.partial(
        mhsa_kernel, num_heads=num_heads, head_dim=head_dim, group=G,
        tokens=N, scale=scale, matmul_dtype=compute_dtype)

    out_dt = out_dtype if out_dtype is not None else x.dtype
    out = pl.pallas_call(
        kernel,
        out_shape=jax.ShapeDtypeStruct((BG, C, GN), out_dt),
        grid_spec=pltpu.PrefetchScalarGridSpec(
            num_scalar_prefetch=0,
            grid=(BG,),
            in_specs=[
                pl.BlockSpec((1, C, GN), lambda b: (b, 0, 0)),     # x slab (feature-major)
                pl.BlockSpec((3 * C, C), lambda b: (0, 0)),        # W_qkv (VMEM-resident)
                pl.BlockSpec((3 * C, 1), lambda b: (0, 0)),        # b_qkv
                pl.BlockSpec((C, C), lambda b: (0, 0)),            # W_proj
                pl.BlockSpec((C, 1), lambda b: (0, 0)),            # b_proj
            ],
            out_specs=pl.BlockSpec((1, C, GN), lambda b: (b, 0, 0)),
        ),
        compiler_params=pltpu.CompilerParams(
            dimension_semantics=("parallel",)),
    )(xf, wqkv, bqkv_2d, wproj, bproj_2d)

    # (BG, C, G*N) -> NCHW.
    if G > 1:
        out = out.reshape(BG, C, G, N).transpose(0, 2, 1, 3)
    return out.reshape(B, C, H, W)


def mhsa_reference(x, wqkv, bqkv, wproj, bproj, *, head_dim: int):
    """Pure-JAX reference mirroring the PyTorch forward (eval mode)."""
    B, C, H, W = x.shape
    N = H * W
    nh = C // head_dim
    scale = head_dim ** (-0.5)

    xt = jnp.transpose(x.reshape(B, C, N), (0, 2, 1))            # (B, N, C)
    qkv = xt @ wqkv.T + bqkv                                      # (B, N, 3C)
    qkv = qkv.reshape(B, N, 3, nh, head_dim).transpose(2, 0, 3, 1, 4)
    q, k, v = qkv[0], qkv[1], qkv[2]                              # (B, nh, N, hd)

    s = jnp.einsum("bhqd,bhkd->bhqk", q, k) * scale
    attn = jax.nn.softmax(s, axis=-1)
    ctx = jnp.einsum("bhqk,bhkd->bhqd", attn, v)                  # (B, nh, N, hd)
    ctx = ctx.transpose(0, 2, 1, 3).reshape(B, N, C)
    out = ctx @ wproj.T + bproj                                   # (B, N, C)
    return jnp.transpose(out, (0, 2, 1)).reshape(B, C, H, W)


if __name__ == "__main__":
    # dim=32, head_dim=8 -> 4 heads, spatial 8x8 -> N=64 tokens, batch=2.
    B, C, H, W = 2, 32, 8, 8
    head_dim = 8

    key = jax.random.PRNGKey(0)
    kx, k1, k2, k3, k4 = jax.random.split(key, 5)

    x = jax.random.normal(kx, (B, C, H, W), dtype=jnp.float32)

    # Parameters in torch nn.Linear layout (out_features, in_features), qkv_bias=True.
    wqkv = 0.05 * jax.random.normal(k1, (3 * C, C), dtype=jnp.float32)
    bqkv = 0.05 * jax.random.normal(k2, (3 * C,), dtype=jnp.float32)
    wproj = 0.05 * jax.random.normal(k3, (C, C), dtype=jnp.float32)
    bproj = 0.05 * jax.random.normal(k4, (C,), dtype=jnp.float32)

    ref = mhsa_reference(x, wqkv, bqkv, wproj, bproj, head_dim=head_dim)

    # Exact-f32 path (strict check; tolerance only for the approx EUP reciprocal).
    out = mhsa(x, wqkv, bqkv, wproj, bproj, head_dim=head_dim)
    out = jax.block_until_ready(out)
    assert out.shape == (B, C, H, W)
    max_err = float(jnp.max(jnp.abs(out - ref)))
    assert jnp.allclose(out, ref, atol=2e-3, rtol=2e-3), f"mismatch vs reference: {max_err}"

    # bf16 fast path (full-rate MXU on v5e/v6e/v7x); loose tolerance for rounding.
    out_bf16 = mhsa(x, wqkv, bqkv, wproj, bproj, head_dim=head_dim,
                    compute_dtype=jnp.bfloat16)
    out_bf16 = jax.block_until_ready(out_bf16)
    assert out_bf16.shape == (B, C, H, W)
    bf16_err = float(jnp.max(jnp.abs(out_bf16 - ref)))
    assert jnp.allclose(out_bf16, ref, atol=5e-2, rtol=5e-2), f"bf16 mismatch: {bf16_err}"

    print("KERNEL_OK")
</pallas_src>

<mosaic_0001>
module attributes {stable_mosaic.version = 11 : i64} {
  func.func @mhsa_kernel(%arg0: i32, %arg1: memref<1x32x128xf32, #tpu.memory_space<vmem>>, %arg2: memref<96x32xf32, #tpu.memory_space<vmem>>, %arg3: memref<96x1xf32, #tpu.memory_space<vmem>>, %arg4: memref<32x32xf32, #tpu.memory_space<vmem>>, %arg5: memref<32x1xf32, #tpu.memory_space<vmem>>, %arg6: memref<1x32x128xf32, #tpu.memory_space<vmem>>) attributes {dimension_semantics = [#tpu.dimension_semantics<parallel>], iteration_bounds = array<i64: 1>, scalar_prefetch = 0 : i64, scratch_operands = 0 : i64, tpu.core_type = #tpu.core_type<tc>, window_params = [{transform_indices = @transform_0, window_bounds = array<i64: 1, 32, 128>}, {pipeline_mode = #tpu.pipeline_mode<synchronous>, transform_indices = @transform_1, window_bounds = array<i64: 96, 32>}, {pipeline_mode = #tpu.pipeline_mode<synchronous>, transform_indices = @transform_2, window_bounds = array<i64: 96, 1>}, {pipeline_mode = #tpu.pipeline_mode<synchronous>, transform_indices = @transform_3, window_bounds = array<i64: 32, 32>}, {pipeline_mode = #tpu.pipeline_mode<synchronous>, transform_indices = @transform_4, window_bounds = array<i64: 32, 1>}, {transform_indices = @transform_5, window_bounds = array<i64: 1, 32, 128>}]} {
    %c0 = arith.constant 0 : index
    %c0_0 = arith.constant 0 : index
    %c0_1 = arith.constant 0 : index
    %0 = vector.load %arg1[%c0, %c0_0, %c0_1] : memref<1x32x128xf32, #tpu.memory_space<vmem>>, vector<1x32x128xf32>
    %1 = vector.shape_cast %0 : vector<1x32x128xf32> to vector<32x128xf32>
    %c0_2 = arith.constant 0 : index
    %c0_3 = arith.constant 0 : index
    %2 = vector.load %arg2[%c0_2, %c0_3] : memref<96x32xf32, #tpu.memory_space<vmem>>, vector<96x32xf32>
    %cst = arith.constant dense<0.000000e+00> : vector<96x128xf32>
    %3 = tpu.matmul %2, %1, %cst {dimension_numbers = #tpu.dot_dimension_numbers<[1], [0], [0], [1], [0, 0, 1, 1], [], []>} : vector<96x32xf32>, vector<32x128xf32>, vector<96x128xf32> -> vector<96x128xf32>
    %c0_4 = arith.constant 0 : index
    %c0_5 = arith.constant 0 : index
    %4 = vector.load %arg3[%c0_4, %c0_5] : memref<96x1xf32, #tpu.memory_space<vmem>>, vector<96x1xf32>
    %5 = vector.broadcast %4 : vector<96x1xf32> to vector<96x128xf32>
    %6 = arith.addf %3, %5 : vector<96x128xf32>
    %7 = vector.extract_strided_slice %6 {offsets = [0, 0], sizes = [32, 128], strides = [1, 1]} : vector<96x128xf32> to vector<32x128xf32>
    %cst_6 = arith.constant 0.353553385 : f32
    %8 = vector.broadcast %cst_6 : f32 to vector<32x128xf32>
    %9 = arith.mulf %7, %8 : vector<32x128xf32>
    %10 = vector.extract_strided_slice %6 {offsets = [32, 0], sizes = [32, 128], strides = [1, 1]} : vector<96x128xf32> to vector<32x128xf32>
    %11 = vector.extract_strided_slice %6 {offsets = [64, 0], sizes = [32, 128], strides = [1, 1]} : vector<96x128xf32> to vector<32x128xf32>
    %12 = vector.extract_strided_slice %9 {offsets = [0, 0], sizes = [32, 64], strides = [1, 1]} : vector<32x128xf32> to vector<32x64xf32>
    %13 = vector.shape_cast %12 : vector<32x64xf32> to vector<4x8x64xf32>
    %14 = vector.extract_strided_slice %10 {offsets = [0, 0], sizes = [32, 64], strides = [1, 1]} : vector<32x128xf32> to vector<32x64xf32>
    %15 = vector.shape_cast %14 : vector<32x64xf32> to vector<4x8x64xf32>
    %16 = vector.extract_strided_slice %11 {offsets = [0, 0], sizes = [32, 64], strides = [1, 1]} : vector<32x128xf32> to vector<32x64xf32>
    %17 = vector.shape_cast %16 : vector<32x64xf32> to vector<4x8x64xf32>
    "tpu.trace_start"() <{level = 10 : i32, message = "hdi,hdj->hij"}> : () -> ()
    %cst_7 = arith.constant dense<0.000000e+00> : vector<4x64x64xf32>
    %18 = tpu.matmul %13, %15, %cst_7 {dimension_numbers = #tpu.dot_dimension_numbers<[1], [1], [2], [2], [0, 0, 0, 2, 1, 2], [0], [0]>} : vector<4x8x64xf32>, vector<4x8x64xf32>, vector<4x64x64xf32> -> vector<4x64x64xf32>
    "tpu.trace_stop"() : () -> ()
    %cst_8 = arith.constant dense<0xFF800000> : vector<4x64xf32>
    %19 = vector.multi_reduction <maximumf>, %18, %cst_8 [2] : vector<4x64x64xf32> to vector<4x64xf32>
    %20 = vector.shape_cast %19 : vector<4x64xf32> to vector<4x64x1xf32>
    %21 = vector.broadcast %20 : vector<4x64x1xf32> to vector<4x64x64xf32>
    %22 = arith.subf %18, %21 : vector<4x64x64xf32>
    %23 = math.exp %22 : vector<4x64x64xf32>
    %cst_9 = arith.constant dense<0.000000e+00> : vector<4x64xf32>
    %24 = vector.multi_reduction <add>, %23, %cst_9 [2] : vector<4x64x64xf32> to vector<4x64xf32>
    %25 = vector.shape_cast %24 : vector<4x64xf32> to vector<4x64x1xf32>
    %26 = tpu.reciprocal %25 {approx = true} : vector<4x64x1xf32> -> vector<4x64x1xf32>
    %27 = vector.broadcast %26 : vector<4x64x1xf32> to vector<4x64x64xf32>
    %28 = arith.mulf %23, %27 : vector<4x64x64xf32>
    "tpu.trace_start"() <{level = 10 : i32, message = "hij,hdj->hdi"}> : () -> ()
    %cst_10 = arith.constant dense<0.000000e+00> : vector<4x8x64xf32>
    %29 = tpu.matmul %17, %28, %cst_10 {dimension_numbers = #tpu.dot_dimension_numbers<[2], [2], [1], [1], [0, 0, 0, 1, 1, 1], [0], [0]>} : vector<4x8x64xf32>, vector<4x64x64xf32>, vector<4x8x64xf32> -> vector<4x8x64xf32>
    "tpu.trace_stop"() : () -> ()
    %30 = vector.shape_cast %29 : vector<4x8x64xf32> to vector<32x64xf32>
    %31 = vector.extract_strided_slice %9 {offsets = [0, 64], sizes = [32, 64], strides = [1, 1]} : vector<32x128xf32> to vector<32x64xf32>
    %32 = vector.shape_cast %31 : vector<32x64xf32> to vector<4x8x64xf32>
    %33 = vector.extract_strided_slice %10 {offsets = [0, 64], sizes = [32, 64], strides = [1, 1]} : vector<32x128xf32> to vector<32x64xf32>
    %34 = vector.shape_cast %33 : vector<32x64xf32> to vector<4x8x64xf32>
    %35 = vector.extract_strided_slice %11 {offsets = [0, 64], sizes = [32, 64], strides = [1, 1]} : vector<32x128xf32> to vector<32x64xf32>
    %36 = vector.shape_cast %35 : vector<32x64xf32> to vector<4x8x64xf32>
    "tpu.trace_start"() <{level = 10 : i32, message = "hdi,hdj->hij"}> : () -> ()
    %cst_11 = arith.constant dense<0.000000e+00> : vector<4x64x64xf32>
    %37 = tpu.matmul %32, %34, %cst_11 {dimension_numbers = #tpu.dot_dimension_numbers<[1], [1], [2], [2], [0, 0, 0, 2, 1, 2], [0], [0]>} : vector<4x8x64xf32>, vector<4x8x64xf32>, vector<4x64x64xf32> -> vector<4x64x64xf32>
    "tpu.trace_stop"() : () -> ()
    %cst_12 = arith.constant dense<0xFF800000> : vector<4x64xf32>
    %38 = vector.multi_reduction <maximumf>, %37, %cst_12 [2] : vector<4x64x64xf32> to vector<4x64xf32>
    %39 = vector.shape_cast %38 : vector<4x64xf32> to vector<4x64x1xf32>
    %40 = vector.broadcast %39 : vector<4x64x1xf32> to vector<4x64x64xf32>
    %41 = arith.subf %37, %40 : vector<4x64x64xf32>
    %42 = math.exp %41 : vector<4x64x64xf32>
    %cst_13 = arith.constant dense<0.000000e+00> : vector<4x64xf32>
    %43 = vector.multi_reduction <add>, %42, %cst_13 [2] : vector<4x64x64xf32> to vector<4x64xf32>
    %44 = vector.shape_cast %43 : vector<4x64xf32> to vector<4x64x1xf32>
    %45 = tpu.reciprocal %44 {approx = true} : vector<4x64x1xf32> -> vector<4x64x1xf32>
    %46 = vector.broadcast %45 : vector<4x64x1xf32> to vector<4x64x64xf32>
    %47 = arith.mulf %42, %46 : vector<4x64x64xf32>
    "tpu.trace_start"() <{level = 10 : i32, message = "hij,hdj->hdi"}> : () -> ()
    %cst_14 = arith.constant dense<0.000000e+00> : vector<4x8x64xf32>
    %48 = tpu.matmul %36, %47, %cst_14 {dimension_numbers = #tpu.dot_dimension_numbers<[2], [2], [1], [1], [0, 0, 0, 1, 1, 1], [0], [0]>} : vector<4x8x64xf32>, vector<4x64x64xf32>, vector<4x8x64xf32> -> vector<4x8x64xf32>
    "tpu.trace_stop"() : () -> ()
    %49 = vector.shape_cast %48 : vector<4x8x64xf32> to vector<32x64xf32>
    %50 = tpu.concatenate %30, %49 in 1 : vector<32x64xf32>, vector<32x64xf32> -> vector<32x128xf32>
    %c0_15 = arith.constant 0 : index
    %c0_16 = arith.constant 0 : index
    %51 = vector.load %arg4[%c0_15, %c0_16] : memref<32x32xf32, #tpu.memory_space<vmem>>, vector<32x32xf32>
    %cst_17 = arith.constant dense<0.000000e+00> : vector<32x128xf32>
    %52 = tpu.matmul %51, %50, %cst_17 {dimension_numbers = #tpu.dot_dimension_numbers<[1], [0], [0], [1], [0, 0, 1, 1], [], []>} : vector<32x32xf32>, vector<32x128xf32>, vector<32x128xf32> -> vector<32x128xf32>
    %c0_18 = arith.constant 0 : index
    %c0_19 = arith.constant 0 : index
    %53 = vector.load %arg5[%c0_18, %c0_19] : memref<32x1xf32, #tpu.memory_space<vmem>>, vector<32x1xf32>
    %54 = vector.broadcast %53 : vector<32x1xf32> to vector<32x128xf32>
    %55 = arith.addf %52, %54 : vector<32x128xf32>
    %c0_20 = arith.constant 0 : index
    %c0_21 = arith.constant 0 : index
    %c0_22 = arith.constant 0 : index
    %56 = vector.load %arg6[%c0_20, %c0_21, %c0_22] : memref<1x32x128xf32, #tpu.memory_space<vmem>>, vector<1x32x128xf32>
    %57 = vector.shape_cast %56 : vector<1x32x128xf32> to vector<32x128xf32>
    %58 = vector.shape_cast %55 : vector<32x128xf32> to vector<1x32x128xf32>
    tpu.vector_store %arg6[%c0_20, %c0_21, %c0_22], %58 {strides = array<i32>} : memref<1x32x128xf32, #tpu.memory_space<vmem>>, vector<1x32x128xf32>,
    return
  }
  func.func @transform_0(%arg0: i32) -> (i32, i32, i32) {
    %c0_i32 = arith.constant 0 : i32
    %c0_i32_0 = arith.constant 0 : i32
    %c0_i32_1 = arith.constant 0 : i32
    return %arg0, %c0_i32, %c0_i32_0 : i32, i32, i32
  }
  func.func @transform_1(%arg0: i32) -> (i32, i32) {
    %c0_i32 = arith.constant 0 : i32
    %c0_i32_0 = arith.constant 0 : i32
    %c0_i32_1 = arith.constant 0 : i32
    return %c0_i32, %c0_i32_0 : i32, i32
  }
  func.func @transform_2(%arg0: i32) -> (i32, i32) {
    %c0_i32 = arith.constant 0 : i32
    %c0_i32_0 = arith.constant 0 : i32
    %c0_i32_1 = arith.constant 0 : i32
    return %c0_i32, %c0_i32_0 : i32, i32
  }
  func.func @transform_3(%arg0: i32) -> (i32, i32) {
    %c0_i32 = arith.constant 0 : i32
    %c0_i32_0 = arith.constant 0 : i32
    %c0_i32_1 = arith.constant 0 : i32
    return %c0_i32, %c0_i32_0 : i32, i32
  }
  func.func @transform_4(%arg0: i32) -> (i32, i32) {
    %c0_i32 = arith.constant 0 : i32
    %c0_i32_0 = arith.constant 0 : i32
    %c0_i32_1 = arith.constant 0 : i32
    return %c0_i32, %c0_i32_0 : i32, i32
  }
  func.func @transform_5(%arg0: i32) -> (i32, i32, i32) {
    %c0_i32 = arith.constant 0 : i32
    %c0_i32_0 = arith.constant 0 : i32
    %c0_i32_1 = arith.constant 0 : i32
    return %arg0, %c0_i32, %c0_i32_0 : i32, i32, i32
  }
}

</mosaic_0001>

<bundles_post_ra>
// kernel: tpu_custom_call.1
= control target key start
LH: loop header
LB: loop body
LE: loop exit
PB: predicated region body
PF: predicated region fallthrough
CT: control target
= control target key end

     0   :  { %vm109_vm0 = vcmask 261120   ;;  %v4159_v3 = vmov 0   ;;  %s5389_s0 = inlined_call_operand.vmem [shape: f32[1,32,128], index: 0, kind: input, shape index: {}]   ;;  %s5390_s1 = inlined_call_operand.vmem [shape: f32[96,32], index: 1, kind: input, shape index: {}]   ;;  %s5391_s2 = inlined_call_operand.vmem [shape: f32[96,1], index: 2, kind: input, shape index: {}]   ;;  %s5392_s3 = inlined_call_operand.vmem [shape: f32[32,32], index: 3, kind: input, shape index: {}]   ;;  %s5393_s4 = inlined_call_operand.vmem [shape: f32[32,1], index: 4, kind: input, shape index: {}]   ;;  %s5394_s5 = inlined_call_operand.hbm [shape: f32[1,32,128], index: 5, kind: output, shape index: {}]  }
   0x1   :  { %v24_v0 = vld [vmem:[%s5389_s0 + $0x18] sm:$0xff]  ;;  %v23_v1 = vld [vmem:[%s5389_s0 + $0x10] sm:$0xff]  ;;  %v25_v2 = vld [vmem:[%s5390_s1] sm:$0xff]  ;;  %3879 = vset.pattern.permute.xlu0 %v4159_v3  ;;  %3880 = vset.pattern.permute.xlu1 %v4159_v3 }
   0x2   :  { %3566 = vmatprep.subr.mxu0 %v24_v0  ;;  %v22_v4 = vld [vmem:[%s5389_s0 + $0x8] sm:$0xff]  ;;  %3574 = vmatprep.mubr.msk.f32.mxu0 %vm109_vm0, %v25_v2  ;;  %v21_v5 = vld [vmem:[%s5389_s0] sm:$0xff] }
   0x3   :  { %3567 = vmatpush3.msra.mxu0 %v24_v0  ;;  %v37_v6 = vld [vmem:[%s5391_s2] sm:$0xff]  ;;  %v26_v8 = vld [vmem:[%s5390_s1 + $0x8] sm:$0xff] }
   0x4   :  { %3568 = vmatprep.subr.mxu0 %v23_v1  ;;  %51 = vperm.xlu0 %3879, %v37_v6   ;;  %v41_v7 = vld [vmem:[%s5391_s2 + $0x20] sm:$0xff]  ;;  %v38_v9 = vld [vmem:[%s5391_s2 + $0x8] sm:$0xff] }
   0x5   :  { %3569 = vmatpush3.msra.mxu0 %v23_v1  ;;  %71 = vperm.xlu1 %3880, %v41_v7  }
   0x6   :  { %3570 = vmatprep.subr.mxu0 %v22_v4 }
   0x7   :  { %3571 = vmatpush3.msra.mxu0 %v22_v4 }
   0x8   :  { %10 = vsyncpa [#allocation3], 0  ;;  %3572 = vmatprep.subr.mxu0 %v21_v5  ;;  %v27_v10 = vld [vmem:[%s5390_s1 + $0x10] sm:$0xff]  ;;  %v40_v11 = vld [vmem:[%s5391_s2 + $0x18] sm:$0xff]  ;;  %56 = vperm.xlu0 %3879, %v38_v9   ;;  %s4160_s15 = smov 64   ;;  %vm307_vm1 = vcmask 64512  }
   0x9   :  { %3573 = vmatpush3.msra.mxu0 %v21_v5  ;;  %v28_v12 = vld [vmem:[%s5390_s1 + $0x18] sm:$0xff]  ;;  %v42_v13 = vld [vmem:[%s5391_s2 + $0x28] sm:$0xff]  ;;  %66 = vperm.xlu1 %3880, %v40_v11   ;;  %v29_v14 = vld [vmem:[%s5390_s1 + $0x20] sm:$0xff]  ;;  %vm920_vm2 = vcmask 523264   ;;  %vm4162_vm3 = vmmov 0   ;;  %s4163_s0 = smov [#allocation2]  }
   0xa   :  { %3575 = vmatmul.mubr.msk.f32.vlgmr.msra.gmra.mxu0 %vm109_vm0, %v26_v8  ;;  %v39_v15 = vld [vmem:[%s5391_s2 + $0x10] sm:$0xff]  ;;  %v30_v16 = vld [vmem:[%s5390_s1 + $0x28] sm:$0xff]  ;;  %v44_v18 = vld [vmem:[%s5391_s2 + $0x38] sm:$0xff]  ;;  %s3235_s11 = sshll.u32 %s4163_s0, 4  ;;  %s3236_s11 = int_to_ptr.vmem [resolvable:$true] %s3235_s11 }
   0xb   :  { %3577 = vmatprep.mubr.msk.f32.mxu0 %vm109_vm0, %v27_v10  ;;  %v31_v17 = vld [vmem:[%s5390_s1 + $0x30] sm:$0xff]  ;;  %v32_v19 = vld [vmem:[%s5390_s1 + $0x38] sm:$0xff]  ;;  %v33_v20 = vld [vmem:[%s5390_s1 + $0x40] sm:$0xff]  ;;  %p4142_p1 = scmp.lt.s32.totalorder %s3236_s11, %s3236_s11 }
   0xc   :  { %76 = vperm.xlu0 %3879, %v42_v13   ;;  %v34_v21 = vld [vmem:[%s5390_s1 + $0x48] sm:$0xff]  ;;  %v35_v22 = vld [vmem:[%s5390_s1 + $0x50] sm:$0xff]  ;;  %v36_v23 = vld [vmem:[%s5390_s1 + $0x58] sm:$0xff] }
   0xd   :  { %61 = vperm.xlu1 %3880, %v39_v15   ;;  %v43_v46 = vld [vmem:[%s5391_s2 + $0x30] sm:$0xff]  ;;  %v46_v47 = vld [vmem:[%s5391_s2 + $0x48] sm:$0xff]  ;;  %v48_v48 = vld [vmem:[%s5391_s2 + $0x58] sm:$0xff] }
   0xe   :  { %3578 = vmatmul.mubr.msk.f32.gmra.mxu0 %vm109_vm0, %v28_v12  ;;  %v45_v49 = vld [vmem:[%s5391_s2 + $0x40] sm:$0xff] }
   0xf   :  { %3580 = vmatprep.mubr.msk.f32.mxu0 %vm109_vm0, %v29_v14 }
  0x11   :  { %86 = vperm.xlu1 %3880, %v44_v18  }
  0x12   :  { %3581 = vmatmul.mubr.msk.f32.gmra.mxu0 %vm109_vm0, %v30_v16 }
  0x13   :  { %3583 = vmatprep.mubr.msk.f32.mxu0 %vm109_vm0, %v31_v17 }
  0x16   :  { %3584 = vmatmul.mubr.msk.f32.gmra.mxu0 %vm109_vm0, %v32_v19 }
  0x17   :  { %3586 = vmatprep.mubr.msk.f32.mxu0 %vm109_vm0, %v33_v20 }
  0x1a   :  { %3587 = vmatmul.mubr.msk.f32.gmra.mxu0 %vm109_vm0, %v34_v21 }
  0x1b   :  { %3589 = vmatprep.mubr.msk.f32.mxu0 %vm109_vm0, %v35_v22 }
  0x1e   :  { %3590 = vmatmul.mubr.msk.f32.gmra.mxu0 %vm109_vm0, %v36_v23 }
  0x7f   :  { %v52_v24 = vpop.permute.xlu0 %51 }
  0x80   :  { %v72_v35 = vpop.permute.xlu1 %71 }
  0x83   :  { %v57_v25 = vpop.permute.xlu0 %56 }
  0x84   :  { %v67_v40 = vpop.permute.xlu1 %66 }
  0x87   :  { %v77_v38 = vpop.permute.xlu0 %76 }
  0x88   :  { %v62_v43 = vpop.permute.xlu1 %61 }
  0x8c   :  { %v87_v50 = vpop.permute.xlu1 %86 }
  0xca   :  { %v3576_v26 = vpop.f32.mrf.mxu0 }
  0xcb   :  { %v218_v27 = vadd.f32 %v3576_v26, %v57_v25 }
  0xcc   :  { %v212_v28 = vpop.f32.mrf.mxu0 }
  0xcd   :  { %v272_v29 = vmul.f32 0.35355338, %v218_v27  ;;  %v213_v30 = vadd.f32 %v212_v28, %v52_v24 }
  0xce   :  { %v3579_v31 = vpop.f32.mrf.mxu0 }
  0xcf   :  { %v271_v32 = vmul.f32 0.35355338, %v213_v30  ;;  %437 = vxpose.xlu1.b32.start.end [1/1] (short) (narrow) %v272_v29, 64  ;;  %v228_v41 = vadd.f32 %v3579_v31, %v67_v40 }
  0xd0   :  { %v222_v33 = vpop.f32.mrf.mxu0 }
  0xd1   :  { %275 = vxpose.xlu0.b32.start.end [1/1] (short) (narrow) %v271_v32, 64  ;;  %v274_v42 = vmul.f32 0.35355338, %v228_v41  ;;  %v223_v44 = vadd.f32 %v222_v33, %v62_v43 }
  0xd2   :  { %v3582_v34 = vpop.f32.mrf.mxu0 }
  0xd3   :  { %v238_v39 = vadd.f32 %v3582_v34, %v77_v38  ;;  %v4277_v45 = vmul.f32 0.35355338, %v223_v44 }
  0xd4   :  { %v232_v36 = vpop.f32.mrf.mxu0 }
  0xd5   :  { %v233_v37 = vadd.f32 %v232_v36, %v72_v35 }
  0xd6   :  { %v3585_v53 = vpop.f32.mrf.mxu0 }
  0xd7   :  { %3592 = vmatprep.subr.mxu1 %v233_v37  ;;  %v4298_v56 = vadd.f32 %v3585_v53, %v87_v50 }
  0xd8   :  { %3593 = vmatpush3.msra.mxu1 %v233_v37  ;;  %v242_v15 = vpop.f32.mrf.mxu0 }
  0xd9   :  { %3606 = vmatprep.subr.mxu1 %v238_v39 }
  0xda   :  { %v4329_v19 = vpop.f32.mrf.mxu0 }
  0xdc   :  { %v4336_v22 = vpop.f32.mrf.mxu0 }
  0xde   :  { %v3591_v24 = vpop.f32.mrf.mxu0 }
  0xe0   :  { %v4365_v40 = vpop.f32.mrf.mxu0 }
  0xe1   :  { %5404 = vst [vmem:[#allocation6_spill] sm:$0xff] %v4365_v40 }
  0xec   :  { %759 = vxpose.xlu1.b32.start.end [1/1] (short) (narrow) %v274_v42, 64 }
 0x109   :  { %598 = vxpose.xlu1.b32.start.end [1/1] (short) (narrow) %v4277_v45, 64 }
 0x116   :  { %81 = vperm.xlu0 %3879, %v43_v46  }
 0x11a   :  { %96 = vperm.xlu0 %3879, %v46_v47  }
 0x11e   :  { %1831 = vrot.lane.b32.xlu0 %v272_v29, %s4160_s15 }
 0x122   :  { %106 = vperm.xlu0 %3879, %v48_v48  }
 0x126   :  { %2169 = vrot.lane.b32.xlu0 %v274_v42, %s4160_s15 }
 0x143   :  { %1662 = vrot.lane.b32.xlu1 %v271_v32, %s4160_s15 }
 0x147   :  { %91 = vperm.xlu1 %3880, %v45_v49  }
 0x14b   :  { %1867 = vrot.lane.b32.xlu1 %v238_v39, %s4160_s15  ;;  %v453_v51 = vpop.trf.xlu1 }
 0x14d   :  { %v291_v52 = vpop.trf.xlu0 }
 0x14e   :  { %3594 = vmatprep.mubr.msk.f32.mxu1 %vm307_vm1, %v291_v52 }
 0x14f   :  { %1698 = vrot.lane.b32.xlu1 %v233_v37, %s4160_s15  ;;  %v454_v54 = vpop.trf.xlu1 }
 0x151   :  { %v292_v55 = vpop.trf.xlu0 }
 0x152   :  { %3595 = vmatmul.mubr.msk.f32.vlgmr.msra.gmra.mxu1 %vm307_vm1, %v292_v55 }
 0x153   :  { %3607 = vmatpush3.msra.mxu1 %v238_v39  ;;  %v455_v57 = vpop.trf.xlu1 }
 0x154   :  { %3634 = vmatprep.subr.mxu1 %v4298_v56 }
 0x155   :  { %v293_v58 = vpop.trf.xlu0 }
 0x156   :  { %3597 = vmatprep.mubr.msk.f32.mxu1 %vm307_vm1, %v293_v58 }
 0x157   :  { %v456_v59 = vpop.trf.xlu1 }
 0x159   :  { %v294_v60 = vpop.trf.xlu0 }
 0x15a   :  { %3598 = vmatmul.mubr.msk.f32.gmra.mxu1 %vm307_vm1, %v294_v60 }
 0x15b   :  { %v457_v61 = vpop.trf.xlu1 }
 0x15d   :  { %v295_v62 = vpop.trf.xlu0 }
 0x15e   :  { %3600 = vmatprep.mubr.msk.f32.mxu1 %vm307_vm1, %v295_v62 }
 0x15f   :  { %v458_v63 = vpop.trf.xlu1 }
 0x161   :  { %v296_v0 = vpop.trf.xlu0 }
 0x162   :  { %3601 = vmatmul.mubr.msk.f32.gmra.mxu1 %vm307_vm1, %v296_v0 }
 0x163   :  { %v459_v1 = vpop.trf.xlu1 }
 0x165   :  { %v297_v2 = vpop.trf.xlu0 }
 0x166   :  { %3603 = vmatprep.mubr.msk.f32.mxu1 %vm307_vm1, %v297_v2 }
 0x167   :  { %v460_v3 = vpop.trf.xlu1 }
 0x169   :  { %v298_v4 = vpop.trf.xlu0 }
 0x16a   :  { %3604 = vmatmul.mubr.msk.f32.gmra.mxu1 %vm307_vm1, %v298_v4 }
 0x16b   :  { %3608 = vmatprep.mubr.msk.f32.mxu1 %vm307_vm1, %v453_v51  ;;  %v775_v5 = vpop.trf.xlu1 }
 0x16e   :  { %3609 = vmatmul.mubr.msk.f32.vlgmr.msra.gmra.mxu1 %vm307_vm1, %v454_v54 }
 0x16f   :  { %3635 = vmatpush3.msra.mxu1 %v4298_v56  ;;  %3611 = vmatprep.mubr.msk.f32.mxu1 %vm307_vm1, %v455_v57  ;;  %v776_v6 = vpop.trf.xlu1 }
 0x172   :  { %3612 = vmatmul.mubr.msk.f32.gmra.mxu1 %vm307_vm1, %v456_v59 }
 0x173   :  { %v777_v7 = vpop.trf.xlu1  ;;  %3614 = vmatprep.mubr.msk.f32.mxu1 %vm307_vm1, %v457_v61 }
 0x176   :  { %3615 = vmatmul.mubr.msk.f32.gmra.mxu1 %vm307_vm1, %v458_v63 }
 0x177   :  { %v778_v8 = vpop.trf.xlu1  ;;  %3617 = vmatprep.mubr.msk.f32.mxu1 %vm307_vm1, %v459_v1 }
 0x17a   :  { %3618 = vmatmul.mubr.msk.f32.gmra.mxu1 %vm307_vm1, %v460_v3 }
 0x17b   :  { %v779_v9 = vpop.trf.xlu1  ;;  %3636 = vmatprep.mubr.msk.f32.mxu1 %vm307_vm1, %v775_v5 }
 0x17e   :  { %3637 = vmatmul.mubr.msk.f32.vlgmr.msra.gmra.mxu1 %vm307_vm1, %v776_v6 }
 0x17f   :  { %v780_v10 = vpop.trf.xlu1  ;;  %3639 = vmatprep.mubr.msk.f32.mxu1 %vm307_vm1, %v777_v7 }
 0x182   :  { %3640 = vmatmul.mubr.msk.f32.gmra.mxu1 %vm307_vm1, %v778_v8 }
 0x183   :  { %v781_v11 = vpop.trf.xlu1  ;;  %3642 = vmatprep.mubr.msk.f32.mxu1 %vm307_vm1, %v779_v9 }
 0x186   :  { %3643 = vmatmul.mubr.msk.f32.gmra.mxu1 %vm307_vm1, %v780_v10 }
 0x187   :  { %v782_v12 = vpop.trf.xlu1  ;;  %3645 = vmatprep.mubr.msk.f32.mxu1 %vm307_vm1, %v781_v11 }
 0x18a   :  { %3646 = vmatmul.mubr.msk.f32.gmra.mxu1 %vm307_vm1, %v782_v12 }
 0x18b   :  { %v614_v13 = vpop.trf.xlu1 }
 0x18c   :  { %3622 = vmatprep.mubr.msk.f32.mxu0 %vm307_vm1, %v614_v13 }
 0x18f   :  { %v615_v14 = vpop.trf.xlu1 }
 0x191   :  { %v82_v16 = vpop.permute.xlu0 %81 }
 0x192   :  { %v4326_v17 = vadd.f32 %v242_v15, %v82_v16 }
 0x193   :  { %v616_v18 = vpop.trf.xlu1 }
 0x194   :  { %3620 = vmatprep.subr.mxu0 %v4326_v17 }
 0x195   :  { %3621 = vmatpush3.msra.mxu0 %v4326_v17  ;;  %v4332_v20 = vpop.permute.xlu0 %96 }
 0x196   :  { %3623 = vmatmul.mubr.msk.f32.vlgmr.msra.gmra.mxu0 %vm307_vm1, %v615_v14 }
 0x197   :  { %v617_v21 = vpop.trf.xlu1  ;;  %3625 = vmatprep.mubr.msk.f32.mxu0 %vm307_vm1, %v616_v18 }
 0x199   :  { %v4338_v23 = vpop.permute.xlu0 %1831 }
 0x19a   :  { %3626 = vmatmul.mubr.msk.f32.gmra.mxu0 %vm307_vm1, %v617_v21 }
 0x19b   :  { %v618_v25 = vpop.trf.xlu1 }
 0x19c   :  { %3628 = vmatprep.mubr.msk.f32.mxu0 %vm307_vm1, %v618_v25 }
 0x19d   :  { %v107_v26 = vpop.permute.xlu0 %106 }
 0x19e   :  { %v4342_v27 = vadd.f32 %v3591_v24, %v107_v26  ;;  %v47_v24 = vld [vmem:[%s5391_s2 + $0x50] sm:$0xff] }
 0x19f   :  { %v619_v28 = vpop.trf.xlu1 }
 0x1a0   :  { %5403 = vst [vmem:[#allocation5_spill] sm:$0xff] %v4342_v27  ;;  %3629 = vmatmul.mubr.msk.f32.gmra.mxu0 %vm307_vm1, %v619_v28 }
 0x1a3   :  { %v620_v29 = vpop.trf.xlu1 }
 0x1a4   :  { %3631 = vmatprep.mubr.msk.f32.mxu0 %vm307_vm1, %v620_v29 }
 0x1a7   :  { %v621_v30 = vpop.trf.xlu1 }
 0x1a8   :  { %3632 = vmatmul.mubr.msk.f32.gmra.mxu0 %vm307_vm1, %v621_v30 }
 0x1b5   :  { %v4450_v25 = vpop.permute.xlu1 %1662 }
 0x1c2   :  { %v4456_v29 = vpop.permute.xlu1 %91 }
 0x212   :  { %v4347_v31 = vpop.f32.mrf.mxu1 }
 0x213   :  { %v924_v32 = vsel %vm920_vm2, %v4347_v31, -inf }
 0x214   :  { %925 = vmax.xlane.f32.xlu1 %v924_v32  ;;  %v4351_v33 = vpop.f32.mrf.mxu1 }
 0x215   :  { %v921_v34 = vsel %vm920_vm2, %v4351_v33, -inf }
 0x218   :  { %922 = vmax.xlane.f32.xlu1 %v921_v34  ;;  %v4462_v34 = vpop.permute.xlu1 %1867 }
 0x219   :  { %5405 = vst [vmem:[#allocation7_spill] sm:$0xff] %v4462_v34 }
 0x21a   :  { %v4355_v35 = vpop.f32.mrf.mxu1 }
 0x21b   :  { %v930_v50 = vsel %vm920_vm2, %v4355_v35, -inf }
 0x21c   :  { %v4357_v36 = vpop.f32.mrf.mxu1 }
 0x21d   :  { %v927_v53 = vsel %vm920_vm2, %v4357_v36, -inf }
 0x222   :  { %v4359_v37 = vpop.f32.mrf.mxu1 }
 0x223   :  { %v936_v52 = vsel %vm920_vm2, %v4359_v37, -inf }
 0x224   :  { %v4361_v38 = vpop.f32.mrf.mxu1 }
 0x225   :  { %v933_v57 = vsel %vm920_vm2, %v4361_v38, -inf }
 0x22a   :  { %v4363_v39 = vpop.f32.mrf.mxu1 }
 0x22b   :  { %v942_v61 = vsel %vm920_vm2, %v4363_v39, -inf }
 0x22c   :  { %v4367_v41 = vpop.f32.mrf.mxu1 }
 0x22d   :  { %v939_v1 = vsel %vm920_vm2, %v4367_v41, -inf }
 0x22e   :  { %v4377_v47 = vpop.f32.mrf.mxu1 }
 0x22f   :  { %v948_v5 = vsel %vm920_vm2, %v4377_v47, -inf }
 0x230   :  { %v4385_v51 = vpop.f32.mrf.mxu1 }
 0x231   :  { %v945_v9 = vsel %vm920_vm2, %v4385_v51, -inf }
 0x232   :  { %v4391_v54 = vpop.f32.mrf.mxu1 }
 0x233   :  { %v954_v12 = vsel %vm920_vm2, %v4391_v54, -inf }
 0x234   :  { %v4401_v60 = vpop.f32.mrf.mxu1 }
 0x235   :  { %v951_v14 = vsel %vm920_vm2, %v4401_v60, -inf }
 0x236   :  { %v4409_v0 = vpop.f32.mrf.mxu1 }
 0x237   :  { %v960_v15 = vsel %vm920_vm2, %v4409_v0, -inf }
 0x238   :  { %v4417_v4 = vpop.f32.mrf.mxu1 }
 0x239   :  { %v957_v16 = vsel %vm920_vm2, %v4417_v4, -inf }
 0x23a   :  { %v4425_v8 = vpop.f32.mrf.mxu1 }
 0x23b   :  { %v966_v18 = vsel %vm920_vm2, %v4425_v8, -inf }
 0x23c   :  { %v4431_v11 = vpop.f32.mrf.mxu1 }
 0x23d   :  { %v963_v13 = vsel %vm920_vm2, %v4431_v11, -inf }
 0x23e   :  { %v4445_v21 = vpop.f32.mrf.mxu1 }
 0x23f   :  { %v996_v26 = vsel %vm920_vm2, %v4445_v21, -inf }
 0x240   :  { %v4454_v28 = vpop.f32.mrf.mxu1 }
 0x241   :  { %v993_v30 = vsel %vm920_vm2, %v4454_v28, -inf }
 0x242   :  { %v4460_v32 = vpop.f32.mrf.mxu1 }
 0x256   :  { %v4369_v42 = vpop.f32.mrf.mxu0 }
 0x257   :  { %v972_v43 = vsel %vm920_vm2, %v4369_v42, -inf }
 0x258   :  { %973 = vmax.xlane.f32.xlu0 %v972_v43  ;;  %v4373_v44 = vpop.f32.mrf.mxu0  ;;  %v1002_v43 = vsel %vm920_vm2, %v4460_v32, -inf }
 0x259   :  { %v969_v46 = vsel %vm920_vm2, %v4373_v44, -inf }
 0x25a   :  { %970 = vmax.xlane.f32.xlu1 %v969_v46  ;;  %v4379_v48 = vpop.f32.mrf.mxu0  ;;  %v4466_v46 = vpop.f32.mrf.mxu1 }
 0x25b   :  { %v978_v49 = vsel %vm920_vm2, %v4379_v48, -inf }
 0x25c   :  { %979 = vmax.xlane.f32.xlu0 %v978_v49  ;;  %v4393_v55 = vpop.f32.mrf.mxu0  ;;  %v999_v49 = vsel %vm920_vm2, %v4466_v46, -inf }
 0x25d   :  { %v975_v59 = vsel %vm920_vm2, %v4393_v55, -inf }
 0x25e   :  { %931 = vmax.xlane.f32.xlu1 %v930_v50  ;;  %v4470_v50 = vpop.f32.mrf.mxu1 }
 0x260   :  { %937 = vmax.xlane.f32.xlu0 %v936_v52  ;;  %v4397_v58 = vpop.f32.mrf.mxu0  ;;  %v4472_v52 = vpop.permute.xlu1 %1698 }
 0x261   :  { %v984_v62 = vsel %vm920_vm2, %v4397_v58, -inf  ;;  %5406 = vst [vmem:[#allocation8_spill] sm:$0xff] %v4472_v52 }
 0x262   :  { %928 = vmax.xlane.f32.xlu1 %v927_v53  ;;  %v4407_v63 = vpop.f32.mrf.mxu0  ;;  %v1008_v53 = vsel %vm920_vm2, %v4470_v50, -inf }
 0x263   :  { %v981_v2 = vsel %vm920_vm2, %v4407_v63, -inf }
 0x264   :  { %934 = vmax.xlane.f32.xlu0 %v933_v57  ;;  %v4476_v57 = vpop.f32.mrf.mxu1 }
 0x266   :  { %976 = vmax.xlane.f32.xlu1 %v975_v59 }
 0x268   :  { %943 = vmax.xlane.f32.xlu0 %v942_v61  ;;  %v4415_v3 = vpop.f32.mrf.mxu0 }
 0x269   :  { %v990_v6 = vsel %vm920_vm2, %v4415_v3, -inf }
 0x26a   :  { %985 = vmax.xlane.f32.xlu1 %v984_v62  ;;  %v4423_v7 = vpop.f32.mrf.mxu0  ;;  %v1005_v62 = vsel %vm920_vm2, %v4476_v57, -inf }
 0x26b   :  { %v987_v10 = vsel %vm920_vm2, %v4423_v7, -inf }
 0x26c   :  { %940 = vmax.xlane.f32.xlu0 %v939_v1  ;;  %v4481_v1 = vpop.f32.mrf.mxu1 }
 0x26e   :  { %982 = vmax.xlane.f32.xlu1 %v981_v2 }
 0x270   :  { %949 = vmax.xlane.f32.xlu0 %v948_v5 }
 0x272   :  { %991 = vmax.xlane.f32.xlu1 %v990_v6 }
 0x274   :  { %946 = vmax.xlane.f32.xlu0 %v945_v9  ;;  %v1014_v9 = vsel %vm920_vm2, %v4481_v1, -inf }
 0x276   :  { %988 = vmax.xlane.f32.xlu1 %v987_v10  ;;  %v4486_v10 = vpop.f32.mrf.mxu1 }
 0x278   :  { %955 = vmax.xlane.f32.xlu0 %v954_v12 }
 0x27a   :  { %964 = vmax.xlane.f32.xlu1 %v963_v13 }
 0x27c   :  { %952 = vmax.xlane.f32.xlu0 %v951_v14 }
 0x280   :  { %961 = vmax.xlane.f32.xlu0 %v960_v15 }
 0x284   :  { %958 = vmax.xlane.f32.xlu0 %v957_v16  ;;  %v4500_v16 = vpop.permute.xlu0 %2169 }
 0x288   :  { %967 = vmax.xlane.f32.xlu0 %v966_v18 }
 0x28b   :  { %101 = vperm.xlu1 %3880, %v47_v24  }
 0x28c   :  { %997 = vmax.xlane.f32.xlu0 %v996_v26 }
 0x290   :  { %994 = vmax.xlane.f32.xlu0 %v993_v30 }
 0x294   :  { %1003 = vmax.xlane.f32.xlu0 %v1002_v43 }
 0x298   :  { %1000 = vmax.xlane.f32.xlu0 %v999_v49 }
 0x29c   :  { %1009 = vmax.xlane.f32.xlu0 %v1008_v53 }
 0x29d   :  { %v926_v59 = vpop.xlane.xlu1 %925 }
 0x29e   :  { %v1018_v61 = vsub.f32 %v4347_v31, %v926_v59  ;;  %v1011_v31 = vsel %vm920_vm2, %v4486_v10, -inf }
 0x2a0   :  { %v1051_v2 = vmul.f32 1.442695, %v1018_v61  ;;  %1006 = vmax.xlane.f32.xlu0 %v1005_v62 }
 0x2a1   :  { %v923_v5 = vpop.xlane.xlu1 %922 }
 0x2a2   :  { %3881 = vpow2.f32 %v1051_v2  ;;  %v1017_v6 = vsub.f32 %v4351_v33, %v923_v5 }
 0x2a4   :  { %v1049_v12 = vmul.f32 1.442695, %v1017_v6  ;;  %1015 = vmax.xlane.f32.xlu0 %v1014_v9 }
 0x2a6   :  { %3883 = vpow2.f32 %v1049_v12 }
 0x2a8   :  { %1012 = vmax.xlane.f32.xlu0 %v1011_v31 }
 0x2af   :  { %v4490_v13 = vpop.eup %3881 }
 0x2b0   :  { %v1116_v14 = vsel %vm920_vm2, %v4490_v13, 0.0 }
 0x2b1   :  { %1117 = vadd.xlane.f32.xlu1 %v1116_v14 }
 0x2b3   :  { %v4494_v15 = vpop.eup %3883 }
 0x2b4   :  { %v1113_v33 = vsel %vm920_vm2, %v4494_v15, 0.0 }
 0x2b5   :  { %1114 = vadd.xlane.f32.xlu1 %v1113_v33 }
 0x2be   :  { %2000 = vrot.lane.b32.xlu0 %v4277_v45, %s4160_s15 }
 0x2e1   :  { %v974_v18 = vpop.xlane.xlu0 %973 }
 0x2e2   :  { %v1034_v24 = vsub.f32 %v4369_v42, %v974_v18 }
 0x2e3   :  { %v971_v26 = vpop.xlane.xlu1 %970 }
 0x2e4   :  { %v1083_v30 = vmul.f32 1.442695, %v1034_v24  ;;  %v1033_v43 = vsub.f32 %v4373_v44, %v971_v26 }
 0x2e5   :  { %v980_v49 = vpop.xlane.xlu0 %979 }
 0x2e6   :  { %3885 = vpow2.f32 %v1083_v30  ;;  %v1081_v53 = vmul.f32 1.442695, %v1033_v43  ;;  %v1036_v2 = vsub.f32 %v4379_v48, %v980_v49 }
 0x2e7   :  { %v932_v59 = vpop.xlane.xlu1 %931 }
 0x2e8   :  { %3887 = vpow2.f32 %v1081_v53  ;;  %v1020_v61 = vsub.f32 %v4355_v35, %v932_v59  ;;  %v1087_v9 = vmul.f32 1.442695, %v1036_v2 }
 0x2e9   :  { %v938_v62 = vpop.xlane.xlu0 %937 }
 0x2ea   :  { %v1055_v45 = vmul.f32 1.442695, %v1020_v61  ;;  %v1022_v33 = vsub.f32 %v4359_v37, %v938_v62 }
 0x2eb   :  { %v929_v5 = vpop.xlane.xlu1 %928 }
 0x2ec   :  { %3889 = vpow2.f32 %v1055_v45  ;;  %v1019_v6 = vsub.f32 %v4357_v36, %v929_v5  ;;  %v1059_v43 = vmul.f32 1.442695, %v1022_v33 }
 0x2ed   :  { %v935_v42 = vpop.xlane.xlu0 %934 }
 0x2ee   :  { %v1053_v12 = vmul.f32 1.442695, %v1019_v6  ;;  %v1021_v36 = vsub.f32 %v4361_v38, %v935_v42 }
 0x2ef   :  { %v977_v31 = vpop.xlane.xlu1 %976 }
 0x2f0   :  { %3891 = vpow2.f32 %v1053_v12  ;;  %v1035_v44 = vsub.f32 %v4393_v55, %v977_v31  ;;  %v1057_v53 = vmul.f32 1.442695, %v1021_v36 }
 0x2f1   :  { %v944_v14 = vpop.xlane.xlu0 %943  ;;  %3893 = vpow2.f32 %v1087_v9 }
 0x2f2   :  { %v1085_v35 = vmul.f32 1.442695, %v1035_v44 }
 0x2f3   :  { %v4509_v18 = vpop.eup %3885  ;;  %v986_v48 = vpop.xlane.xlu1 %985 }
 0x2f4   :  { %v1164_v24 = vsel %vm920_vm2, %v4509_v18, 0.0  ;;  %3895 = vpow2.f32 %v1085_v35  ;;  %v1038_v59 = vsub.f32 %v4397_v58, %v986_v48 }
 0x2f5   :  { %v4513_v26 = vpop.eup %3887  ;;  %1165 = vadd.xlane.f32.xlu0 %v1164_v24  ;;  %v941_v30 = vpop.xlane.xlu0 %940  ;;  %3897 = vpow2.f32 %v1059_v43 }
 0x2f6   :  { %v1161_v55 = vsel %vm920_vm2, %v4513_v26, 0.0  ;;  %3899 = vpow2.f32 %v1057_v53  ;;  %v1091_v42 = vmul.f32 1.442695, %v1038_v59 }
 0x2f7   :  { %v983_v49 = vpop.xlane.xlu1 %982  ;;  %1162 = vadd.xlane.f32.xlu1 %v1161_v55 }
 0x2f8   :  { %v1037_v9 = vsub.f32 %v4407_v63, %v983_v49  ;;  %v1023_v49 = vsub.f32 %v4367_v41, %v941_v30 }
 0x2f9   :  { %v4518_v37 = vpop.eup %3889  ;;  %v950_v61 = vpop.xlane.xlu0 %949 }
 0x2fa   :  { %v1026_v62 = vsub.f32 %v4377_v47, %v950_v61  ;;  %v1122_v38 = vsel %vm920_vm2, %v4518_v37, 0.0  ;;  %v1089_v48 = vmul.f32 1.442695, %v1037_v9 }
 0x2fb   :  { %v992_v2 = vpop.xlane.xlu1 %991  ;;  %1123 = vadd.xlane.f32.xlu1 %v1122_v38  ;;  %v1061_v38 = vmul.f32 1.442695, %v1023_v49 }
 0x2fc   :  { %v1067_v45 = vmul.f32 1.442695, %v1026_v62  ;;  %v1040_v5 = vsub.f32 %v4415_v3, %v992_v2  ;;  %v1024_v3 = vsub.f32 %v4363_v39, %v944_v14 }
 0x2fd   :  { %v4525_v6 = vpop.eup %3891  ;;  %v947_v12 = vpop.xlane.xlu0 %946 }
 0x2fe   :  { %3901 = vpow2.f32 %v1067_v45  ;;  %v1095_v58 = vmul.f32 1.442695, %v1040_v5  ;;  %v1025_v31 = vsub.f32 %v4385_v51, %v947_v12  ;;  %v1119_v47 = vsel %vm920_vm2, %v4525_v6, 0.0  ;;  %v4531_v44 = vpop.eup %3893 }
 0x2ff   :  { %1120 = vadd.xlane.f32.xlu1 %v1119_v47  ;;  %v1170_v24 = vsel %vm920_vm2, %v4531_v44, 0.0  ;;  %v1063_v43 = vmul.f32 1.442695, %v1024_v3 }
 0x300   :  { %3903 = vpow2.f32 %v1095_v58  ;;  %v1065_v33 = vmul.f32 1.442695, %v1025_v31 }
 0x301   :  { %v956_v35 = vpop.xlane.xlu0 %955  ;;  %3905 = vpow2.f32 %v1091_v42  ;;  %v4537_v36 = vpop.eup %3895 }
 0x302   :  { %v1028_v63 = vsub.f32 %v4391_v54, %v956_v35  ;;  %3907 = vpow2.f32 %v1065_v33  ;;  %v1167_v14 = vsel %vm920_vm2, %v4537_v36, 0.0  ;;  %v4543_v53 = vpop.eup %3897  ;;  %v989_v54 = vpop.xlane.xlu1 %988 }
 0x303   :  { %1171 = vadd.xlane.f32.xlu1 %v1170_v24  ;;  %3909 = vpow2.f32 %v1089_v48  ;;  %v4545_v62 = vpop.eup %3899  ;;  %v1039_v2 = vsub.f32 %v4423_v7, %v989_v54 }
 0x304   :  { %v1071_v51 = vmul.f32 1.442695, %v1028_v63  ;;  %v1125_v58 = vsel %vm920_vm2, %v4545_v62, 0.0 }
 0x305   :  { %v953_v55 = vpop.xlane.xlu0 %952  ;;  %v1093_v12 = vmul.f32 1.442695, %v1039_v2 }
 0x306   :  { %v1027_v39 = vsub.f32 %v4401_v60, %v953_v55  ;;  %3911 = vpow2.f32 %v1071_v51  ;;  %v1128_v60 = vsel %vm920_vm2, %v4543_v53, 0.0  ;;  %v965_v7 = vpop.xlane.xlu1 %964 }
 0x307   :  { %1168 = vadd.xlane.f32.xlu1 %v1167_v14  ;;  %3913 = vpow2.f32 %v1063_v43  ;;  %v1031_v3 = vsub.f32 %v4431_v11, %v965_v7 }
 0x308   :  { %v1069_v59 = vmul.f32 1.442695, %v1027_v39 }
 0x309   :  { %v962_v61 = vpop.xlane.xlu0 %961  ;;  %v1077_v49 = vmul.f32 1.442695, %v1031_v3 }
 0x30a   :  { %v1030_v41 = vsub.f32 %v4409_v0, %v962_v61  ;;  %3915 = vpow2.f32 %v1069_v59 }
 0x30b   :  { %v4551_v30 = vpop.eup %3901  ;;  %1129 = vadd.xlane.f32.xlu1 %v1128_v60  ;;  %3917 = vpow2.f32 %v1061_v38 }
 0x30c   :  { %v1075_v45 = vmul.f32 1.442695, %v1030_v41  ;;  %v1140_v5 = vsel %vm920_vm2, %v4551_v30, 0.0 }
 0x30d   :  { %v4555_v42 = vpop.eup %3903  ;;  %1141 = vadd.xlane.f32.xlu0 %v1140_v5  ;;  %v959_v9 = vpop.xlane.xlu0 %958 }
 0x30e   :  { %v1029_v0 = vsub.f32 %v4417_v4, %v959_v9  ;;  %v4560_v31 = vpop.eup %3905  ;;  %3919 = vpow2.f32 %v1075_v45  ;;  %v1182_v47 = vsel %vm920_vm2, %v4555_v42, 0.0 }
 0x30f   :  { %1126 = vadd.xlane.f32.xlu1 %v1125_v58  ;;  %v4564_v33 = vpop.eup %3907  ;;  %3921 = vpow2.f32 %v1093_v12  ;;  %v1176_v63 = vsel %vm920_vm2, %v4560_v31, 0.0 }
 0x310   :  { %v1073_v35 = vmul.f32 1.442695, %v1029_v0  ;;  %v4570_v24 = vpop.eup %3909  ;;  %v1137_v43 = vsel %vm920_vm2, %v4564_v33, 0.0 }
 0x311   :  { %1183 = vadd.xlane.f32.xlu0 %v1182_v47  ;;  %v968_v48 = vpop.xlane.xlu0 %967  ;;  %v1173_v14 = vsel %vm920_vm2, %v4570_v24, 0.0 }
 0x312   :  { %v1032_v4 = vsub.f32 %v4425_v8, %v968_v48  ;;  %3923 = vpow2.f32 %v1073_v35 }
 0x313   :  { %1177 = vadd.xlane.f32.xlu1 %v1176_v63  ;;  %v4574_v55 = vpop.eup %3911 }
 0x314   :  { %v1079_v51 = vmul.f32 1.442695, %v1032_v4  ;;  %v4576_v39 = vpop.eup %3913  ;;  %v1146_v59 = vsel %vm920_vm2, %v4574_v55, 0.0 }
 0x315   :  { %1138 = vadd.xlane.f32.xlu0 %v1137_v43  ;;  %v998_v11 = vpop.xlane.xlu0 %997  ;;  %v1134_v41 = vsel %vm920_vm2, %v4576_v39, 0.0 }
 0x316   :  { %3925 = vpow2.f32 %v1079_v51  ;;  %v1042_v8 = vsub.f32 %v4445_v21, %v998_v11 }
 0x317   :  { %1174 = vadd.xlane.f32.xlu1 %v1173_v14  ;;  %v4583_v61 = vpop.eup %3915  ;;  %3927 = vpow2.f32 %v1077_v49 }
 0x318   :  { %v1099_v54 = vmul.f32 1.442695, %v1042_v8  ;;  %v4588_v21 = vpop.eup %3917  ;;  %v1143_v45 = vsel %vm920_vm2, %v4583_v61, 0.0 }
 0x319   :  { %1147 = vadd.xlane.f32.xlu0 %v1146_v59  ;;  %v995_v38 = vpop.xlane.xlu0 %994 }
 0x31a   :  { %3929 = vpow2.f32 %v1099_v54  ;;  %v1041_v2 = vsub.f32 %v4454_v28, %v995_v38  ;;  %v1131_v28 = vsel %vm920_vm2, %v4588_v21, 0.0 }
 0x31b   :  { %1135 = vadd.xlane.f32.xlu1 %v1134_v41  ;;  %v4592_v5 = vpop.eup %3919 }
 0x31c   :  { %v1097_v60 = vmul.f32 1.442695, %v1041_v2  ;;  %v4597_v7 = vpop.eup %3921  ;;  %v1152_v58 = vsel %vm920_vm2, %v4592_v5, 0.0 }
 0x31d   :  { %1144 = vadd.xlane.f32.xlu0 %v1143_v45  ;;  %v1004_v9 = vpop.xlane.xlu0 %1003 }
 0x31e   :  { %3931 = vpow2.f32 %v1097_v60  ;;  %v1044_v12 = vsub.f32 %v4460_v32, %v1004_v9  ;;  %v1179_v32 = vsel %vm920_vm2, %v4597_v7, 0.0 }
 0x31f   :  { %1132 = vadd.xlane.f32.xlu1 %v1131_v28  ;;  %v4601_v3 = vpop.eup %3923 }
 0x320   :  { %v1103_v0 = vmul.f32 1.442695, %v1044_v12 }
 0x321   :  { %1153 = vadd.xlane.f32.xlu0 %v1152_v58  ;;  %v1001_v47 = vpop.xlane.xlu0 %1000 }
 0x322   :  { %3933 = vpow2.f32 %v1103_v0  ;;  %v1043_v35 = vsub.f32 %v4466_v46, %v1001_v47  ;;  %v1149_v46 = vsel %vm920_vm2, %v4601_v3, 0.0 }
 0x323   :  { %v4606_v48 = vpop.eup %3925  ;;  %1180 = vadd.xlane.f32.xlu1 %v1179_v32 }
 0x324   :  { %v1101_v4 = vmul.f32 1.442695, %v1043_v35  ;;  %v1158_v63 = vsel %vm920_vm2, %v4606_v48, 0.0  ;;  %v4610_v43 = vpop.eup %3927  ;;  %v5395_v35 = vmov 0.0  }
 0x325   :  { %1159 = vadd.xlane.f32.xlu0 %v1158_v63  ;;  %v1010_v51 = vpop.xlane.xlu0 %1009  ;;  %v1155_v38 = vsel %vm920_vm2, %v4610_v43, 0.0  ;;  %3648 = vmatprep.subr.mxu0 %v5395_v35 }
 0x326   :  { %3935 = vpow2.f32 %v1101_v4  ;;  %v1046_v49 = vsub.f32 %v4470_v50, %v1010_v51  ;;  %3667 = vmatprep.subr.mxu1 %v5395_v35  ;;  %3664 = vmatprep.mubr.msk.f32.mxu0 %vm4162_vm3, %v5395_v35 }
 0x327   :  { %v4615_v11 = vpop.eup %3929  ;;  %1150 = vadd.xlane.f32.xlu1 %v1149_v46  ;;  %3683 = vmatprep.mubr.msk.f32.mxu1 %vm4162_vm3, %v5395_v35 }
 0x328   :  { %5407 = vst [vmem:[#allocation9_spill] sm:$0xff] %v4615_v11  ;;  %v1107_v8 = vmul.f32 1.442695, %v1046_v49  ;;  %v1188_v14 = vsel %vm920_vm2, %v4615_v11, 0.0 }
 0x329   :  { %1189 = vadd.xlane.f32.xlu0 %v1188_v14  ;;  %v1007_v54 = vpop.xlane.xlu0 %1006  ;;  %v4659_v14 = vpop.permute.xlu1 %101 }
 0x32a   :  { %3937 = vpow2.f32 %v1107_v8  ;;  %v1045_v59 = vsub.f32 %v4476_v57, %v1007_v54  ;;  %5410 = vst [vmem:[#allocation12_spill] sm:$0xff] %v4659_v14  ;;  %v5411_v14 = vmov 0.0  }
 0x32b   :  { %v4622_v2 = vpop.eup %3931  ;;  %1156 = vadd.xlane.f32.xlu1 %v1155_v38 }
 0x32c   :  { %5408 = vst [vmem:[#allocation10_spill] sm:$0xff] %v4622_v2  ;;  %v1105_v50 = vmul.f32 1.442695, %v1045_v59  ;;  %v1185_v45 = vsel %vm920_vm2, %v4622_v2, 0.0 }
 0x32d   :  { %v1016_v41 = vpop.xlane.xlu0 %1015 }
 0x32e   :  { %3939 = vpow2.f32 %v1105_v50  ;;  %v1048_v60 = vsub.f32 %v4481_v1, %v1016_v41 }
 0x32f   :  { %v4627_v9 = vpop.eup %3933  ;;  %1186 = vadd.xlane.f32.xlu1 %v1185_v45 }
 0x330   :  { %v1111_v12 = vmul.f32 1.442695, %v1048_v60  ;;  %v1194_v57 = vsel %vm920_vm2, %v4627_v9, 0.0 }
 0x331   :  { %1195 = vadd.xlane.f32.xlu0 %v1194_v57  ;;  %v1013_v28 = vpop.xlane.xlu0 %1012 }
 0x332   :  { %3941 = vpow2.f32 %v1111_v12  ;;  %v1047_v0 = vsub.f32 %v4486_v10, %v1013_v28 }
 0x333   :  { %v4632_v58 = vpop.eup %3935 }
 0x334   :  { %5409 = vst [vmem:[#allocation11_spill] sm:$0xff] %v4632_v58  ;;  %v1109_v47 = vmul.f32 1.442695, %v1047_v0  ;;  %v1191_v1 = vsel %vm920_vm2, %v4632_v58, 0.0 }
 0x335   :  { %1192 = vadd.xlane.f32.xlu0 %v1191_v1  ;;  %v4666_v45 = vpop.permute.xlu0 %2000 }
 0x336   :  { %3943 = vpow2.f32 %v1109_v47 }
 0x337   :  { %v4638_v32 = vpop.eup %3937 }
 0x338   :  { %v1200_v4 = vsel %vm920_vm2, %v4638_v32, 0.0 }
 0x339   :  { %1201 = vadd.xlane.f32.xlu0 %v1200_v4 }
 0x33a   :  { %v1118_v54 = vpop.xlane.xlu1 %1117 }
 0x33b   :  { %v4642_v10 = vpop.eup %3939 }
 0x33c   :  { %v1197_v63 = vsel %vm920_vm2, %v4642_v10, 0.0 }
 0x33d   :  { %1198 = vadd.xlane.f32.xlu0 %v1197_v63 }
 0x33e   :  { %v1115_v59 = vpop.xlane.xlu1 %1114 }
 0x33f   :  { %v4646_v51 = vpop.eup %3941 }
 0x340   :  { %v1206_v49 = vsel %vm920_vm2, %v4646_v51, 0.0 }
 0x341   :  { %1207 = vadd.xlane.f32.xlu0 %v1206_v49 }
 0x343   :  { %v4650_v46 = vpop.eup %3943 }
 0x344   :  { %v1203_v8 = vsel %vm920_vm2, %v4650_v46, 0.0 }
 0x345   :  { %1204 = vadd.xlane.f32.xlu0 %v1203_v8 }
 0x362   :  { %1834 = vxpose.xlu1.b32.start.end [1/1] (short) (narrow) %v4338_v23, 64 }
 0x372   :  { %1665 = vxpose.xlu0.b32.start.end [1/1] (short) (narrow) %v4450_v25, 64 }
 0x37e   :  { %v4670_v57 = vpop.xlane.xlu0 %1165 }
 0x380   :  { %v4662_v38 = vpop.xlane.xlu1 %1162 }
 0x384   :  { %v1124_v50 = vpop.xlane.xlu1 %1123 }
 0x388   :  { %v1121_v41 = vpop.xlane.xlu1 %1120 }
 0x38c   :  { %v4664_v60 = vpop.xlane.xlu1 %1171 }
 0x390   :  { %v4668_v12 = vpop.xlane.xlu1 %1168 }
 0x394   :  { %v1130_v28 = vpop.xlane.xlu1 %1129 }
 0x396   :  { %v4672_v23 = vpop.xlane.xlu0 %1141 }
 0x398   :  { %v1127_v0 = vpop.xlane.xlu1 %1126 }
 0x39a   :  { %v1184_v47 = vpop.xlane.xlu0 %1183 }
 0x39c   :  { %v4674_v25 = vpop.xlane.xlu1 %1177  ;;  %2036 = vrot.lane.b32.xlu1 %v4326_v17, %s4160_s15 }
 0x39e   :  { %v4678_v1 = vpop.xlane.xlu0 %1138 }
 0x3a0   :  { %v4680_v4 = vpop.xlane.xlu1 %1174 }
 0x3a2   :  { %v1148_v63 = vpop.xlane.xlu0 %1147 }
 0x3a4   :  { %v1136_v49 = vpop.xlane.xlu1 %1135 }
 0x3a5   :  { %3945 = vrcp.f32 %v1136_v49 }
 0x3a6   :  { %v1145_v8 = vpop.xlane.xlu0 %1144 }
 0x3a8   :  { %v1133_v35 = vpop.xlane.xlu1 %1132 }
 0x3a9   :  { %3947 = vrcp.f32 %v1133_v35 }
 0x3aa   :  { %v1154_v34 = vpop.xlane.xlu0 %1153  ;;  %3949 = vrcp.f32 %v1130_v28 }
 0x3ab   :  { %3951 = vrcp.f32 %v1127_v0 }
 0x3ac   :  { %v1181_v27 = vpop.xlane.xlu1 %1180 }
 0x3ae   :  { %v1160_v2 = vpop.xlane.xlu0 %1159 }
 0x3af   :  { %3953 = vrcp.f32 %v1160_v2 }
 0x3b0   :  { %v1151_v11 = vpop.xlane.xlu1 %1150  ;;  %3955 = vrcp.f32 %v1124_v50 }
 0x3b2   :  { %v3946_v58 = vpop.eup %3945  ;;  %v4684_v49 = vpop.xlane.xlu0 %1189 }
 0x3b3   :  { %v1248_v17 = vmul.f32 %v3946_v58, %v4576_v39 }
 0x3b4   :  { %v1157_v52 = vpop.xlane.xlu1 %1156 }
 0x3b5   :  { %3957 = vrcp.f32 %v1157_v52  ;;  %3649 = vmatpush3.xpose.msk.msra.mxu0 %vm920_vm2, %v1248_v17 }
 0x3b6   :  { %v3948_v40 = vpop.eup %3947  ;;  %3650 = vmatprep.subr.mxu0 %v5411_v14  ;;  %3959 = vrcp.f32 %v1121_v41 }
 0x3b7   :  { %2205 = vrot.lane.b32.xlu0 %v4298_v56, %s4160_s15  ;;  %v1247_v2 = vmul.f32 %v3948_v40, %v4588_v21  ;;  %v3950_v35 = vpop.eup %3949  ;;  %3961 = vrcp.f32 %v1154_v34 }
 0x3b8   :  { %v3952_v52 = vpop.eup %3951  ;;  %3963 = vrcp.f32 %v1118_v54  ;;  %v1246_v58 = vmul.f32 %v3950_v35, %v4543_v53 }
 0x3b9   :  { %3651 = vmatpush3.xpose.msk.msra.mxu0 %vm920_vm2, %v1247_v2  ;;  %3965 = vrcp.f32 %v1151_v11  ;;  %v1245_v40 = vmul.f32 %v3952_v52, %v4545_v62 }
 0x3ba   :  { %v4691_v39 = vpop.xlane.xlu0 %1195  ;;  %3652 = vmatprep.subr.mxu0 %v5411_v14  ;;  %3967 = vrcp.f32 %v1115_v59 }
 0x3bb   :  { %3969 = vrcp.f32 %v1148_v63 }
 0x3bc   :  { %v3954_v50 = vpop.eup %3953  ;;  %3971 = vrcp.f32 %v1184_v47 }
 0x3bd   :  { %3653 = vmatpush3.xpose.msk.msra.mxu0 %vm920_vm2, %v1246_v58  ;;  %v1256_v56 = vmul.f32 %v3954_v50, %v4606_v48  ;;  %v3956_v34 = vpop.eup %3955  ;;  %3973 = vrcp.f32 %v1145_v8 }
 0x3be   :  { %v4697_v41 = vpop.xlane.xlu0 %1192  ;;  %3654 = vmatprep.subr.mxu0 %v5411_v14  ;;  %v1244_v48 = vmul.f32 %v3956_v34, %v4518_v37  ;;  %3975 = vrcp.f32 %v1181_v27 }
 0x3bf   :  { %3668 = vmatpush3.xpose.msk.msra.mxu1 %vm920_vm2, %v1256_v56  ;;  %3977 = vrcp.f32 %v4672_v23 }
 0x3c0   :  { %3669 = vmatprep.subr.mxu1 %v5411_v14  ;;  %3979 = vrcp.f32 %v4674_v25 }
 0x3c1   :  { %3655 = vmatpush3.xpose.msk.msra.mxu0 %vm920_vm2, %v1245_v40  ;;  %3981 = vrcp.f32 %v4678_v1 }
 0x3c2   :  { %v3958_v53 = vpop.eup %3957  ;;  %v1202_v21 = vpop.xlane.xlu0 %1201  ;;  %3656 = vmatprep.subr.mxu0 %v5411_v14  ;;  %3983 = vrcp.f32 %v4680_v4 }
 0x3c3   :  { %v1255_v11 = vmul.f32 %v3958_v53, %v4610_v43  ;;  %v3960_v54 = vpop.eup %3959  ;;  %v5412_v53 = vld [vmem:[#allocation12_spill] sm:$0xff] }
 0x3c4   :  { %v3962_v59 = vpop.eup %3961  ;;  %v1243_v28 = vmul.f32 %v3960_v54, %v4525_v6 }
 0x3c5   :  { %3657 = vmatpush3.xpose.msk.msra.mxu0 %vm920_vm2, %v1244_v48  ;;  %2003 = vxpose.xlu1.b32.start.end [1/1] (short) (narrow) %v4666_v45, 64  ;;  %v3964_v37 = vpop.eup %3963  ;;  %v1254_v43 = vmul.f32 %v3962_v59, %v4592_v5  ;;  %v5414_v48 = vld [vmem:[#allocation8_spill] sm:$0xff] }
 0x3c6   :  { %3670 = vmatpush3.xpose.msk.msra.mxu1 %vm920_vm2, %v1255_v11  ;;  %v1199_v62 = vpop.xlane.xlu0 %1198  ;;  %3658 = vmatprep.subr.mxu0 %v5411_v14  ;;  %v3966_v0 = vpop.eup %3965  ;;  %v1242_v27 = vmul.f32 %v3964_v37, %v4490_v13 }
 0x3c7   :  { %3671 = vmatprep.subr.mxu1 %v5411_v14  ;;  %v3968_v6 = vpop.eup %3967  ;;  %v1253_v23 = vmul.f32 %v3966_v0, %v4601_v3  ;;  %v4733_v3 = vadd.f32 %v4336_v22, %v4456_v29 }
 0x3c8   :  { %v3970_v5 = vpop.eup %3969  ;;  %v1241_v47 = vmul.f32 %v3968_v6, %v4494_v15 }
 0x3c9   :  { %3659 = vmatpush3.xpose.msk.msra.mxu0 %vm920_vm2, %v1243_v28  ;;  %v3972_v25 = vpop.eup %3971  ;;  %v1252_v13 = vmul.f32 %v3970_v5, %v4574_v55  ;;  %v5416_v28 = vld [vmem:[#allocation9_spill] sm:$0xff] }
 0x3ca   :  { %3672 = vmatpush3.xpose.msk.msra.mxu1 %vm920_vm2, %v1254_v43  ;;  %3660 = vmatprep.subr.mxu0 %v5411_v14  ;;  %v1208_v45 = vpop.xlane.xlu0 %1207  ;;  %v3974_v1 = vpop.eup %3973  ;;  %v1264_v15 = vmul.f32 %v3972_v25, %v4555_v42  ;;  %v5418_v5 = vld [vmem:[#allocation5_spill] sm:$0xff] }
 0x3cb   :  { %3673 = vmatprep.subr.mxu1 %v5411_v14  ;;  %3985 = vrcp.f32 %v1208_v45  ;;  %v3976_v4 = vpop.eup %3975  ;;  %v1251_v55 = vmul.f32 %v3974_v1, %v4583_v61  ;;  %v1187_v61 = vpop.xlane.xlu1 %1186  ;;  %v5417_v45 = vld [vmem:[#allocation10_spill] sm:$0xff] }
 0x3cc   :  { %3987 = vrcp.f32 %v4664_v60  ;;  %v3978_v8 = vpop.eup %3977  ;;  %v1263_v22 = vmul.f32 %v3976_v4, %v4597_v7 }
 0x3cd   :  { %3661 = vmatpush3.xpose.msk.msra.mxu0 %vm920_vm2, %v1242_v27  ;;  %v3980_v29 = vpop.eup %3979  ;;  %v1250_v42 = vmul.f32 %v3978_v8, %v4551_v30 }
 0x3ce   :  { %3674 = vmatpush3.xpose.msk.msra.mxu1 %vm920_vm2, %v1253_v23  ;;  %3662 = vmatprep.subr.mxu0 %v5411_v14  ;;  %v1205_v63 = vpop.xlane.xlu0 %1204  ;;  %v1262_v7 = vmul.f32 %v3980_v29, %v4560_v31 }
 0x3cf   :  { %3675 = vmatprep.subr.mxu1 %v5411_v14  ;;  %3989 = vrcp.f32 %v1205_v63 }
 0x3d0   :  { %3991 = vrcp.f32 %v4668_v12 }
 0x3d1   :  { %3663 = vmatpush3.xpose.msk.msra.mxu0 %vm920_vm2, %v1241_v47  ;;  %3993 = vrcp.f32 %v1202_v21 }
 0x3d2   :  { %3676 = vmatpush3.xpose.msk.msra.mxu1 %vm920_vm2, %v1252_v13  ;;  %3686 = vmatprep.subr.mxu0 %v5411_v14  ;;  %3995 = vrcp.f32 %v4670_v57  ;;  %v4767_v57 = vadd.f32 %v4329_v19, %v4332_v20  ;;  %v5419_v13 = vld [vmem:[#allocation7_spill] sm:$0xff] }
 0x3d3   :  { %3677 = vmatprep.subr.mxu1 %v5411_v14  ;;  %3997 = vrcp.f32 %v1199_v62 }
 0x3d4   :  { %3665 = vmatmul.mubr.msk.f32.vlgmr.msra.gmra.mxu0 %vm920_vm2, %v4733_v3  ;;  %3999 = vrcp.f32 %v4662_v38 }
 0x3d5   :  { %2172 = vxpose.xlu0.b32.start.end [1/1] (short) (narrow) %v4500_v16, 64  ;;  %3687 = vmatpush3.xpose.msk.msra.mxu0 %vm920_vm2, %v1264_v15  ;;  %v3982_v16 = vpop.eup %3981  ;;  %4001 = vrcp.f32 %v4691_v39 }
 0x3d6   :  { %3678 = vmatpush3.xpose.msk.msra.mxu1 %vm920_vm2, %v1251_v55  ;;  %3688 = vmatprep.subr.mxu0 %v5411_v14  ;;  %v3984_v60 = vpop.eup %3983  ;;  %v1249_v12 = vmul.f32 %v3982_v16, %v4564_v33  ;;  %4003 = vrcp.f32 %v4697_v41 }
 0x3d7   :  { %3679 = vmatprep.subr.mxu1 %v5411_v14  ;;  %3702 = vmatprep.mubr.msk.f32.mxu0 %vm4162_vm3, %v5411_v14  ;;  %v1261_v31 = vmul.f32 %v3984_v60, %v4570_v24  ;;  %4005 = vrcp.f32 %v4684_v49 }
 0x3d8   :  { %v3986_v17 = vpop.eup %3985  ;;  %4007 = vrcp.f32 %v1187_v61 }
 0x3d9   :  { %3689 = vmatpush3.xpose.msk.msra.mxu0 %vm920_vm2, %v1263_v22  ;;  %v3988_v33 = vpop.eup %3987  ;;  %v1272_v2 = vmul.f32 %v3986_v17, %v4646_v51 }
 0x3da   :  { %3680 = vmatpush3.xpose.msk.msra.mxu1 %vm920_vm2, %v1250_v42  ;;  %3690 = vmatprep.subr.mxu0 %v5411_v14  ;;  %v1260_v19 = vmul.f32 %v3988_v33, %v4531_v44 }
 0x3db   :  { %3681 = vmatprep.subr.mxu1 %v5411_v14 }
 0x3dc   :  { %v3990_v35 = vpop.eup %3989 }
 0x3dd   :  { %3691 = vmatpush3.xpose.msk.msra.mxu0 %vm920_vm2, %v1262_v7  ;;  %v3992_v20 = vpop.eup %3991  ;;  %v1271_v24 = vmul.f32 %v3990_v35, %v4650_v46 }
 0x3de   :  { %3682 = vmatpush3.xpose.msk.msra.mxu1 %vm920_vm2, %v1249_v12  ;;  %3692 = vmatprep.subr.mxu0 %v5411_v14  ;;  %v4763_v30 = vpop.trf.xlu1  ;;  %v3994_v38 = vpop.eup %3993  ;;  %v1259_v44 = vmul.f32 %v3992_v20, %v4537_v36 }
 0x3df   :  { %3705 = vmatprep.subr.mxu1 %v5411_v14  ;;  %v3996_v39 = vpop.eup %3995  ;;  %v1270_v52 = vmul.f32 %v3994_v38, %v4638_v32 }
 0x3e0   :  { %v3998_v58 = vpop.eup %3997  ;;  %v1258_v50 = vmul.f32 %v3996_v39, %v4509_v18 }
 0x3e1   :  { %3684 = vmatmul.mubr.msk.f32.vlgmr.msra.gmra.mxu1 %vm920_vm2, %v4767_v57  ;;  %3693 = vmatpush3.xpose.msk.msra.mxu0 %vm920_vm2, %v1261_v31  ;;  %v4000_v56 = vpop.eup %3999  ;;  %v1269_v36 = vmul.f32 %v3998_v58, %v4642_v10  ;;  %v5413_v10 = vld [vmem:[#allocation6_spill] sm:$0xff] }
 0x3e2   :  { %3706 = vmatpush3.xpose.msk.msra.mxu1 %vm920_vm2, %v1272_v2  ;;  %3694 = vmatprep.subr.mxu0 %v5411_v14  ;;  %v4785_v51 = vpop.trf.xlu1  ;;  %v4002_v41 = vpop.eup %4001  ;;  %v1257_v49 = vmul.f32 %v4000_v56, %v4513_v26  ;;  %v4809_v21 = vadd.f32 %v5413_v10, %v5412_v53  ;;  %v5415_v26 = vld [vmem:[#allocation11_spill] sm:$0xff] }
 0x3e3   :  { %3707 = vmatprep.subr.mxu1 %v5411_v14  ;;  %3721 = vmatprep.mubr.msk.f32.mxu1 %vm4162_vm3, %v5411_v14  ;;  %v1268_v40 = vmul.f32 %v4002_v41, %v4627_v9  ;;  %v4004_v18 = vpop.eup %4003 }
 0x3e4   :  { %v1267_v9 = vmul.f32 %v4004_v18, %v5415_v26  ;;  %v4006_v54 = vpop.eup %4005 }
 0x3e5   :  { %3695 = vmatpush3.xpose.msk.msra.mxu0 %vm920_vm2, %v1260_v19  ;;  %v1266_v37 = vmul.f32 %v4006_v54, %v5416_v28  ;;  %v4008_v43 = vpop.eup %4007 }
 0x3e6   :  { %3708 = vmatpush3.xpose.msk.msra.mxu1 %vm920_vm2, %v1271_v24  ;;  %3696 = vmatprep.subr.mxu0 %v5411_v14  ;;  %v1852_v46 = vpop.trf.xlu1  ;;  %v1265_v27 = vmul.f32 %v4008_v43, %v5417_v45 }
 0x3e7   :  { %3709 = vmatprep.subr.mxu1 %v5411_v14 }
 0x3e9   :  { %3697 = vmatpush3.xpose.msk.msra.mxu0 %vm920_vm2, %v1259_v44 }
 0x3ea   :  { %3710 = vmatpush3.xpose.msk.msra.mxu1 %vm920_vm2, %v1270_v52  ;;  %3698 = vmatprep.subr.mxu0 %v5411_v14  ;;  %v1853_v34 = vpop.trf.xlu1 }
 0x3eb   :  { %3711 = vmatprep.subr.mxu1 %v5411_v14 }
 0x3ed   :  { %3699 = vmatpush3.xpose.msk.msra.mxu0 %vm920_vm2, %v1258_v50 }
 0x3ee   :  { %3712 = vmatpush3.xpose.msk.msra.mxu1 %vm920_vm2, %v1269_v36  ;;  %v1681_v32 = vpop.trf.xlu0  ;;  %3700 = vmatprep.subr.mxu0 %v5411_v14  ;;  %v1854_v62 = vpop.trf.xlu1 }
 0x3ef   :  { %3713 = vmatprep.subr.mxu1 %v5411_v14 }
 0x3f1   :  { %3701 = vmatpush3.xpose.msk.msra.mxu0 %vm920_vm2, %v1257_v49 }
 0x3f2   :  { %3714 = vmatpush3.xpose.msk.msra.mxu1 %vm920_vm2, %v1268_v40  ;;  %3724 = vmatprep.subr.mxu0 %v5414_v48  ;;  %v1682_v11 = vpop.trf.xlu0  ;;  %v1855_v6 = vpop.trf.xlu1 }
 0x3f3   :  { %3715 = vmatprep.subr.mxu1 %v5411_v14 }
 0x3f4   :  { %3703 = vmatmul.mubr.msk.f32.vlgmr.msra.gmra.mxu0 %vm920_vm2, %v4809_v21 }
 0x3f5   :  { %3725 = vmatpush3.msra.mxu0 %v5414_v48  ;;  %3726 = vmatprep.mubr.msk.f32.mxu0 %vm307_vm1, %v1681_v32 }
 0x3f6   :  { %3716 = vmatpush3.xpose.msk.msra.mxu1 %vm920_vm2, %v1267_v9  ;;  %v1683_v59 = vpop.trf.xlu0  ;;  %v1856_v25 = vpop.trf.xlu1 }
 0x3f7   :  { %3717 = vmatprep.subr.mxu1 %v5411_v14 }
 0x3f8   :  { %3727 = vmatmul.mubr.msk.f32.vlgmr.msra.gmra.mxu0 %vm307_vm1, %v1682_v11 }
 0x3f9   :  { %3729 = vmatprep.mubr.msk.f32.mxu0 %vm307_vm1, %v1683_v59 }
 0x3fa   :  { %3718 = vmatpush3.xpose.msk.msra.mxu1 %vm920_vm2, %v1266_v37  ;;  %v1684_v0 = vpop.trf.xlu0  ;;  %v1857_v63 = vpop.trf.xlu1 }
 0x3fb   :  { %3719 = vmatprep.subr.mxu1 %v5411_v14 }
 0x3fc   :  { %3730 = vmatmul.mubr.msk.f32.gmra.mxu0 %vm307_vm1, %v1684_v0 }
 0x3fe   :  { %3720 = vmatpush3.xpose.msk.msra.mxu1 %vm920_vm2, %v1265_v27  ;;  %v1685_v23 = vpop.trf.xlu0 }
 0x3ff   :  { %3870 = vmatprep.subr.mxu1 %v5414_v48  ;;  %3732 = vmatprep.mubr.msk.f32.mxu0 %vm307_vm1, %v1685_v23 }
 0x401   :  { %3722 = vmatmul.mubr.msk.f32.vlgmr.msra.gmra.mxu1 %vm920_vm2, %v5418_v5 }
 0x402   :  { %3871 = vmatpush3.msra.mxu1 %v5414_v48  ;;  %v1686_v47 = vpop.trf.xlu0 }
 0x403   :  { %3738 = vmatprep.subr.mxu1 %v5419_v13  ;;  %3733 = vmatmul.mubr.msk.f32.gmra.mxu0 %vm307_vm1, %v1686_v47 }
 0x406   :  { %v1687_v1 = vpop.trf.xlu0 }
 0x407   :  { %3735 = vmatprep.mubr.msk.f32.mxu1 %vm307_vm1, %v1687_v1 }
 0x40a   :  { %v1688_v15 = vpop.trf.xlu0 }
 0x40b   :  { %3736 = vmatmul.mubr.msk.f32.vlgmr.msra.gmra.mxu1 %vm307_vm1, %v1688_v15 }
 0x40c   :  { %3739 = vmatpush3.msra.mxu1 %v5419_v13  ;;  %3740 = vmatprep.mubr.msk.f32.mxu1 %vm307_vm1, %v4763_v30 }
 0x40e   :  { %v2037_v4 = vpop.permute.xlu1 %2036 }
 0x40f   :  { %3741 = vmatmul.mubr.msk.f32.vlgmr.msra.gmra.mxu1 %vm307_vm1, %v4785_v51  ;;  %3752 = vmatprep.subr.mxu0 %v2037_v4 }
 0x410   :  { %3753 = vmatpush3.msra.mxu0 %v2037_v4  ;;  %3743 = vmatprep.mubr.msk.f32.mxu1 %vm307_vm1, %v1852_v46 }
 0x411   :  { %3780 = vmatprep.subr.mxu0 %v5411_v14 }
 0x413   :  { %3744 = vmatmul.mubr.msk.f32.gmra.mxu1 %vm307_vm1, %v1853_v34 }
 0x414   :  { %3746 = vmatprep.mubr.msk.f32.mxu1 %vm307_vm1, %v1854_v62 }
 0x417   :  { %3747 = vmatmul.mubr.msk.f32.gmra.mxu1 %vm307_vm1, %v1855_v6 }
 0x418   :  { %3749 = vmatprep.mubr.msk.f32.mxu1 %vm307_vm1, %v1856_v25 }
 0x41b   :  { %3750 = vmatmul.mubr.msk.f32.gmra.mxu1 %vm307_vm1, %v1857_v63 }
 0x429   :  { %v2206_v55 = vpop.permute.xlu0 %2205 }
 0x42a   :  { %3766 = vmatprep.subr.mxu1 %v2206_v55 }
 0x42b   :  { %3767 = vmatpush3.msra.mxu1 %v2206_v55 }
 0x42c   :  { %3799 = vmatprep.subr.mxu1 %v5411_v14 }
 0x441   :  { %v2019_v8 = vpop.trf.xlu1 }
 0x442   :  { %3754 = vmatprep.mubr.msk.f32.mxu0 %vm307_vm1, %v2019_v8 }
 0x445   :  { %v2020_v22 = vpop.trf.xlu1 }
 0x446   :  { %3755 = vmatmul.mubr.msk.f32.vlgmr.msra.gmra.mxu0 %vm307_vm1, %v2020_v22 }
 0x449   :  { %v2021_v29 = vpop.trf.xlu1 }
 0x44a   :  { %3757 = vmatprep.mubr.msk.f32.mxu0 %vm307_vm1, %v2021_v29 }
 0x44d   :  { %v2022_v42 = vpop.trf.xlu1 }
 0x44e   :  { %3758 = vmatmul.mubr.msk.f32.gmra.mxu0 %vm307_vm1, %v2022_v42 }
 0x451   :  { %v2023_v16 = vpop.trf.xlu1  ;;  %v2188_v61 = vpop.trf.xlu0 }
 0x452   :  { %3760 = vmatprep.mubr.msk.f32.mxu0 %vm307_vm1, %v2023_v16  ;;  %3768 = vmatprep.mubr.msk.f32.mxu1 %vm307_vm1, %v2188_v61 }
 0x455   :  { %v2024_v7 = vpop.trf.xlu1  ;;  %v2189_v60 = vpop.trf.xlu0 }
 0x456   :  { %3761 = vmatmul.mubr.msk.f32.gmra.mxu0 %vm307_vm1, %v2024_v7  ;;  %3769 = vmatmul.mubr.msk.f32.vlgmr.msra.gmra.mxu1 %vm307_vm1, %v2189_v60 }
 0x459   :  { %v2025_v12 = vpop.trf.xlu1  ;;  %v2190_v17 = vpop.trf.xlu0 }
 0x45a   :  { %3763 = vmatprep.mubr.msk.f32.mxu0 %vm307_vm1, %v2025_v12  ;;  %3771 = vmatprep.mubr.msk.f32.mxu1 %vm307_vm1, %v2190_v17 }
 0x45d   :  { %v2026_v30 = vpop.trf.xlu1  ;;  %v2191_v31 = vpop.trf.xlu0 }
 0x45e   :  { %3764 = vmatmul.mubr.msk.f32.gmra.mxu0 %vm307_vm1, %v2026_v30  ;;  %3772 = vmatmul.mubr.msk.f32.gmra.mxu1 %vm307_vm1, %v2191_v31 }
 0x45f   :  { %3796 = vmatprep.mubr.msk.f32.mxu0 %vm4162_vm3, %v5411_v14 }
 0x461   :  { %v2192_v33 = vpop.trf.xlu0 }
 0x462   :  { %3774 = vmatprep.mubr.msk.f32.mxu1 %vm307_vm1, %v2192_v33 }
 0x465   :  { %v2193_v2 = vpop.trf.xlu0 }
 0x466   :  { %3775 = vmatmul.mubr.msk.f32.gmra.mxu1 %vm307_vm1, %v2193_v2 }
 0x469   :  { %v2194_v35 = vpop.trf.xlu0 }
 0x46a   :  { %3777 = vmatprep.mubr.msk.f32.mxu1 %vm307_vm1, %v2194_v35 }
 0x46d   :  { %v2195_v19 = vpop.trf.xlu0 }
 0x46e   :  { %3778 = vmatmul.mubr.msk.f32.gmra.mxu1 %vm307_vm1, %v2195_v19 }
 0x46f   :  { %3815 = vmatprep.mubr.msk.f32.mxu1 %vm4162_vm3, %v5411_v14 }
 0x494   :  { %v4871_v20 = vpop.f32.mrf.mxu0 }
 0x495   :  { %5420 = vst [vmem:[#allocation12_spill] sm:$0xff] %v4871_v20 }
 0x496   :  { %v3666_v24 = vpop.f32.mrf.mxu0 }
 0x4a1   :  { %v4873_v51 = vpop.f32.mrf.mxu1 }
 0x4a2   :  { %5421 = vst [vmem:[#allocation6_spill] sm:$0xff] %v4873_v51 }
 0x4a3   :  { %v3685_v38 = vpop.f32.mrf.mxu1 }
 0x4b4   :  { %v4875_v44 = vpop.f32.mrf.mxu0 }
 0x4b5   :  { %5422 = vst [vmem:[#allocation8_spill] sm:$0xff] %v4875_v44 }
 0x4b6   :  { %v3704_v39 = vpop.f32.mrf.mxu0 }
 0x4b8   :  { %v4877_v52 = vpop.f32.mrf.mxu0 }
 0x4b9   :  { %v2340_v43 = vsel %vm920_vm2, %v4877_v52, -inf }
 0x4ba   :  { %v4879_v58 = vpop.f32.mrf.mxu0 }
 0x4bb   :  { %v2337_v27 = vsel %vm920_vm2, %v4879_v58, -inf }
 0x4bc   :  { %v4881_v46 = vpop.f32.mrf.mxu0 }
 0x4bd   :  { %v2346_v26 = vsel %vm920_vm2, %v4881_v46, -inf }
 0x4be   :  { %v4883_v50 = vpop.f32.mrf.mxu0 }
 0x4bf   :  { %v2343_v59 = vsel %vm920_vm2, %v4883_v50, -inf }
 0x4c1   :  { %v4885_v56 = vpop.f32.mrf.mxu1 }
 0x4c3   :  { %v3723_v36 = vpop.f32.mrf.mxu1  ;;  %v4887_v41 = vpop.f32.mrf.mxu0 }
 0x4c4   :  { %v2352_v32 = vsel %vm920_vm2, %v4887_v41, -inf }
 0x4c5   :  { %2353 = vmax.xlane.f32.xlu1 %v2352_v32  ;;  %v4893_v40 = vpop.f32.mrf.mxu0 }
 0x4c6   :  { %v2349_v10 = vsel %vm920_vm2, %v4893_v40, -inf }
 0x4cb   :  { %v4891_v49 = vpop.f32.mrf.mxu1 }
 0x4cc   :  { %v2358_v34 = vsel %vm920_vm2, %v4891_v49, -inf }
 0x4cd   :  { %2359 = vmax.xlane.f32.xlu1 %v2358_v34  ;;  %v4897_v18 = vpop.f32.mrf.mxu1 }
 0x4ce   :  { %v2355_v53 = vsel %vm920_vm2, %v4897_v18, -inf }
 0x4cf   :  { %2356 = vmax.xlane.f32.xlu0 %v2355_v53  ;;  %v4903_v48 = vpop.f32.mrf.mxu1 }
 0x4d0   :  { %v2364_v1 = vsel %vm920_vm2, %v4903_v48, -inf }
 0x4d1   :  { %2350 = vmax.xlane.f32.xlu1 %v2349_v10  ;;  %v4905_v11 = vpop.f32.mrf.mxu1 }
 0x4d2   :  { %v2361_v63 = vsel %vm920_vm2, %v4905_v11, -inf }
 0x4d3   :  { %v4909_v9 = vpop.f32.mrf.mxu1 }
 0x4d4   :  { %v2370_v25 = vsel %vm920_vm2, %v4909_v9, -inf }
 0x4d5   :  { %2347 = vmax.xlane.f32.xlu1 %v2346_v26  ;;  %v4911_v54 = vpop.f32.mrf.mxu1 }
 0x4d6   :  { %v2367_v13 = vsel %vm920_vm2, %v4911_v54, -inf }
 0x4d7   :  { %v4915_v62 = vpop.f32.mrf.mxu1 }
 0x4d8   :  { %v2376_v28 = vsel %vm920_vm2, %v4915_v62, -inf }
 0x4d9   :  { %2344 = vmax.xlane.f32.xlu1 %v2343_v59  ;;  %2377 = vmax.xlane.f32.xlu0 %v2376_v28  ;;  %v4919_v37 = vpop.f32.mrf.mxu1 }
 0x4da   :  { %v2373_v0 = vsel %vm920_vm2, %v4919_v37, -inf }
 0x4db   :  { %v4925_v45 = vpop.f32.mrf.mxu1 }
 0x4dc   :  { %v2382_v6 = vsel %vm920_vm2, %v4925_v45, -inf }
 0x4dd   :  { %2341 = vmax.xlane.f32.xlu1 %v2340_v43  ;;  %2374 = vmax.xlane.f32.xlu0 %v2373_v0  ;;  %v4931_v23 = vpop.f32.mrf.mxu1 }
 0x4de   :  { %v2379_v47 = vsel %vm920_vm2, %v4931_v23, -inf }
 0x4e1   :  { %2338 = vmax.xlane.f32.xlu1 %v2337_v27  ;;  %2383 = vmax.xlane.f32.xlu0 %v2382_v6 }
 0x4e5   :  { %2380 = vmax.xlane.f32.xlu0 %v2379_v47 }
 0x4e9   :  { %2371 = vmax.xlane.f32.xlu0 %v2370_v25 }
 0x4ed   :  { %2368 = vmax.xlane.f32.xlu0 %v2367_v13 }
 0x4f1   :  { %2365 = vmax.xlane.f32.xlu0 %v2364_v1 }
 0x4f5   :  { %2362 = vmax.xlane.f32.xlu0 %v2361_v63 }
 0x506   :  { %v4943_v15 = vpop.f32.mrf.mxu0 }
 0x507   :  { %v2388_v10 = vsel %vm920_vm2, %v4943_v15, -inf }
 0x508   :  { %v4945_v4 = vpop.f32.mrf.mxu0 }
 0x509   :  { %v2385_v59 = vsel %vm920_vm2, %v4945_v4, -inf }
 0x50e   :  { %v4947_v55 = vpop.f32.mrf.mxu0 }
 0x50f   :  { %v2394_v39 = vsel %vm920_vm2, %v4947_v55, -inf }
 0x510   :  { %v4949_v8 = vpop.f32.mrf.mxu0 }
 0x511   :  { %v2391_v53 = vsel %vm920_vm2, %v4949_v8, -inf }
 0x516   :  { %v4951_v22 = vpop.f32.mrf.mxu1  ;;  %v4953_v29 = vpop.f32.mrf.mxu0 }
 0x517   :  { %v2400_v33 = vsel %vm920_vm2, %v4953_v29, -inf  ;;  %v2412_v43 = vsel %vm920_vm2, %v4951_v22, -inf }
 0x518   :  { %v4955_v42 = vpop.f32.mrf.mxu1  ;;  %v4957_v16 = vpop.f32.mrf.mxu0 }
 0x519   :  { %v2397_v24 = vsel %vm920_vm2, %v4957_v16, -inf  ;;  %v2409_v0 = vsel %vm920_vm2, %v4955_v42, -inf }
 0x51e   :  { %v4959_v61 = vpop.f32.mrf.mxu0  ;;  %v4961_v7 = vpop.f32.mrf.mxu1 }
 0x51f   :  { %v2406_v60 = vsel %vm920_vm2, %v4959_v61, -inf  ;;  %v2418_v26 = vsel %vm920_vm2, %v4961_v7, -inf }
 0x520   :  { %2407 = vmax.xlane.f32.xlu1 %v2406_v60  ;;  %v4965_v12 = vpop.f32.mrf.mxu0  ;;  %v4967_v17 = vpop.f32.mrf.mxu1 }
 0x521   :  { %v2403_v30 = vsel %vm920_vm2, %v4965_v12, -inf  ;;  %v2415_v28 = vsel %vm920_vm2, %v4967_v17, -inf }
 0x524   :  { %2404 = vmax.xlane.f32.xlu1 %v2403_v30 }
 0x526   :  { %v4971_v31 = vpop.f32.mrf.mxu1 }
 0x527   :  { %v2424_v2 = vsel %vm920_vm2, %v4971_v31, -inf }
 0x528   :  { %2401 = vmax.xlane.f32.xlu1 %v2400_v33  ;;  %2425 = vmax.xlane.f32.xlu0 %v2424_v2  ;;  %v4977_v35 = vpop.f32.mrf.mxu1 }
 0x529   :  { %v2421_v19 = vsel %vm920_vm2, %v4977_v35, -inf }
 0x52c   :  { %2398 = vmax.xlane.f32.xlu1 %v2397_v24  ;;  %2422 = vmax.xlane.f32.xlu0 %v2421_v19 }
 0x52e   :  { %v4983_v38 = vpop.f32.mrf.mxu1 }
 0x52f   :  { %v2430_v36 = vsel %vm920_vm2, %v4983_v38, -inf }
 0x530   :  { %2395 = vmax.xlane.f32.xlu1 %v2394_v39  ;;  %2431 = vmax.xlane.f32.xlu0 %v2430_v36  ;;  %v4989_v32 = vpop.f32.mrf.mxu1 }
 0x531   :  { %v2427_v34 = vsel %vm920_vm2, %v4989_v32, -inf }
 0x534   :  { %2392 = vmax.xlane.f32.xlu1 %v2391_v53  ;;  %2428 = vmax.xlane.f32.xlu0 %v2427_v34 }
 0x538   :  { %2389 = vmax.xlane.f32.xlu1 %v2388_v10  ;;  %2419 = vmax.xlane.f32.xlu0 %v2418_v26 }
 0x53c   :  { %2386 = vmax.xlane.f32.xlu1 %v2385_v59  ;;  %2416 = vmax.xlane.f32.xlu0 %v2415_v28 }
 0x540   :  { %2413 = vmax.xlane.f32.xlu0 %v2412_v43 }
 0x544   :  { %2410 = vmax.xlane.f32.xlu0 %v2409_v0 }
 0x54e   :  { %v2354_v27 = vpop.xlane.xlu1 %2353 }
 0x54f   :  { %v2438_v59 = vsub.f32 %v4887_v41, %v2354_v27 }
 0x556   :  { %v5007_v6 = vpop.xlane.xlu1 %2359 }
 0x558   :  { %v5009_v25 = vpop.xlane.xlu0 %2356 }
 0x55a   :  { %v2351_v47 = vpop.xlane.xlu1 %2350 }
 0x55b   :  { %v2437_v43 = vsub.f32 %v4893_v40, %v2351_v47 }
 0x55e   :  { %v2348_v13 = vpop.xlane.xlu1 %2347 }
 0x55f   :  { %v2436_v2 = vsub.f32 %v4881_v46, %v2348_v13  ;;  %v2475_v46 = vmul.f32 1.442695, %v2438_v59 }
 0x561   :  { %v2471_v34 = vmul.f32 1.442695, %v2436_v2 }
 0x562   :  { %v2345_v1 = vpop.xlane.xlu1 %2344  ;;  %v5011_v63 = vpop.xlane.xlu0 %2377 }
 0x563   :  { %v2435_v53 = vsub.f32 %v4883_v50, %v2345_v1 }
 0x566   :  { %v2342_v60 = vpop.xlane.xlu1 %2341  ;;  %v5013_v30 = vpop.xlane.xlu0 %2374 }
 0x567   :  { %v2434_v33 = vsub.f32 %v4877_v52, %v2342_v60  ;;  %v2469_v52 = vmul.f32 1.442695, %v2435_v53 }
 0x569   :  { %v2467_v19 = vmul.f32 1.442695, %v2434_v33 }
 0x56a   :  { %v2339_v24 = vpop.xlane.xlu1 %2338  ;;  %v5017_v39 = vpop.xlane.xlu0 %2383 }
 0x56b   :  { %4009 = vpow2.f32 %v2467_v19  ;;  %v2433_v36 = vsub.f32 %v4879_v58, %v2339_v24  ;;  %v2473_v58 = vmul.f32 1.442695, %v2437_v43 }
 0x56d   :  { %v2465_v10 = vmul.f32 1.442695, %v2433_v36 }
 0x56e   :  { %v5021_v26 = vpop.xlane.xlu0 %2380 }
 0x56f   :  { %4011 = vpow2.f32 %v2465_v10 }
 0x570   :  { %4013 = vpow2.f32 %v2471_v34 }
 0x571   :  { %4015 = vpow2.f32 %v2469_v52 }
 0x572   :  { %v2372_v28 = vpop.xlane.xlu0 %2371  ;;  %4017 = vpow2.f32 %v2475_v46 }
 0x573   :  { %4019 = vpow2.f32 %v2473_v58  ;;  %v2444_v27 = vsub.f32 %v4909_v9, %v2372_v28 }
 0x575   :  { %v2487_v24 = vmul.f32 1.442695, %v2444_v27 }
 0x576   :  { %v2369_v0 = vpop.xlane.xlu0 %2368 }
 0x577   :  { %v2443_v36 = vsub.f32 %v4911_v54, %v2369_v0 }
 0x578   :  { %v5025_v13 = vpop.eup %4009 }
 0x579   :  { %v2532_v50 = vsel %vm920_vm2, %v5025_v13, 0.0  ;;  %v2485_v9 = vmul.f32 1.442695, %v2443_v36 }
 0x57a   :  { %2533 = vadd.xlane.f32.xlu1 %v2532_v50  ;;  %v2366_v1 = vpop.xlane.xlu0 %2365 }
 0x57b   :  { %v2442_v60 = vsub.f32 %v4903_v48, %v2366_v1 }
 0x57c   :  { %v5030_v41 = vpop.eup %4011 }
 0x57d   :  { %v2483_v33 = vmul.f32 1.442695, %v2442_v60  ;;  %v2529_v40 = vsel %vm920_vm2, %v5030_v41, 0.0  ;;  %v5035_v47 = vpop.eup %4013 }
 0x57e   :  { %2530 = vadd.xlane.f32.xlu1 %v2529_v40  ;;  %v2363_v2 = vpop.xlane.xlu0 %2362  ;;  %v2538_v34 = vsel %vm920_vm2, %v5035_v47, 0.0  ;;  %v5041_v53 = vpop.eup %4015 }
 0x57f   :  { %4021 = vpow2.f32 %v2483_v33  ;;  %v2441_v19 = vsub.f32 %v4905_v11, %v2363_v2  ;;  %v2535_v10 = vsel %vm920_vm2, %v5041_v53, 0.0  ;;  %v5045_v59 = vpop.eup %4017 }
 0x580   :  { %v2544_v11 = vsel %vm920_vm2, %v5045_v59, 0.0  ;;  %v5049_v54 = vpop.eup %4019 }
 0x581   :  { %v2481_v48 = vmul.f32 1.442695, %v2441_v19  ;;  %v2541_v28 = vsel %vm920_vm2, %v5049_v54, 0.0 }
 0x582   :  { %2539 = vadd.xlane.f32.xlu1 %v2538_v34 }
 0x583   :  { %4023 = vpow2.f32 %v2481_v48 }
 0x584   :  { %4025 = vpow2.f32 %v2487_v24 }
 0x585   :  { %4027 = vpow2.f32 %v2485_v9 }
 0x586   :  { %2536 = vadd.xlane.f32.xlu1 %v2535_v10  ;;  %v2440_v10 = vsub.f32 %v4891_v49, %v5007_v6  ;;  %v2439_v49 = vsub.f32 %v4897_v18, %v5009_v25 }
 0x58a   :  { %2545 = vadd.xlane.f32.xlu1 %v2544_v11 }
 0x58c   :  { %v5051_v52 = vpop.eup %4021 }
 0x58d   :  { %v2556_v46 = vsel %vm920_vm2, %v5051_v52, 0.0 }
 0x58e   :  { %2542 = vadd.xlane.f32.xlu1 %v2541_v28  ;;  %2557 = vadd.xlane.f32.xlu0 %v2556_v46  ;;  %v2479_v46 = vmul.f32 1.442695, %v2440_v10 }
 0x590   :  { %v5057_v43 = vpop.eup %4023 }
 0x591   :  { %v2553_v0 = vsel %vm920_vm2, %v5057_v43, 0.0  ;;  %v5061_v58 = vpop.eup %4025 }
 0x592   :  { %2554 = vadd.xlane.f32.xlu0 %v2553_v0  ;;  %v2562_v50 = vsel %vm920_vm2, %v5061_v58, 0.0  ;;  %v5065_v1 = vpop.eup %4027  ;;  %v2446_v0 = vsub.f32 %v4915_v62, %v5011_v63  ;;  %v2477_v63 = vmul.f32 1.442695, %v2439_v49 }
 0x593   :  { %v2559_v60 = vsel %vm920_vm2, %v5065_v1, 0.0 }
 0x594   :  { %v2491_v6 = vmul.f32 1.442695, %v2446_v0 }
 0x596   :  { %2563 = vadd.xlane.f32.xlu0 %v2562_v50 }
 0x59a   :  { %2560 = vadd.xlane.f32.xlu0 %v2559_v60 }
 0x5a9   :  { %v5069_v27 = vpop.xlane.xlu1 %2407 }
 0x5ad   :  { %v5071_v33 = vpop.xlane.xlu1 %2404 }
 0x5b1   :  { %v2402_v40 = vpop.xlane.xlu1 %2401  ;;  %v5073_v2 = vpop.xlane.xlu0 %2425 }
 0x5b5   :  { %v2399_v19 = vpop.xlane.xlu1 %2398  ;;  %v5075_v24 = vpop.xlane.xlu0 %2422 }
 0x5b9   :  { %v2396_v36 = vpop.xlane.xlu1 %2395  ;;  %v5077_v48 = vpop.xlane.xlu0 %2431 }
 0x5ba   :  { %v2452_v60 = vsub.f32 %v4947_v55, %v2396_v36 }
 0x5bc   :  { %v2503_v10 = vmul.f32 1.442695, %v2452_v60 }
 0x5bd   :  { %v2393_v34 = vpop.xlane.xlu1 %2392  ;;  %v5079_v9 = vpop.xlane.xlu0 %2428 }
 0x5c1   :  { %v2390_v11 = vpop.xlane.xlu1 %2389  ;;  %v5086_v50 = vpop.xlane.xlu0 %2419 }
 0x5c2   :  { %v2450_v28 = vsub.f32 %v4943_v15, %v2390_v11  ;;  %v2445_v15 = vsub.f32 %v4919_v37, %v5013_v30 }
 0x5c4   :  { %v2499_v20 = vmul.f32 1.442695, %v2450_v28  ;;  %v2489_v55 = vmul.f32 1.442695, %v2445_v15 }
 0x5c5   :  { %v2387_v51 = vpop.xlane.xlu1 %2386  ;;  %v5094_v62 = vpop.xlane.xlu0 %2416 }
 0x5c6   :  { %4029 = vpow2.f32 %v2499_v20  ;;  %v2449_v44 = vsub.f32 %v4945_v4, %v2387_v51  ;;  %v2448_v20 = vsub.f32 %v4925_v45, %v5017_v39  ;;  %v2451_v51 = vsub.f32 %v4949_v8, %v2393_v34 }
 0x5c7   :  { %4031 = vpow2.f32 %v2479_v46  ;;  %v2447_v4 = vsub.f32 %v4931_v23, %v5021_v26  ;;  %v2453_v45 = vsub.f32 %v4957_v16, %v2399_v19 }
 0x5c8   :  { %v2497_v11 = vmul.f32 1.442695, %v2449_v44  ;;  %v2495_v18 = vmul.f32 1.442695, %v2448_v20  ;;  %v2454_v44 = vsub.f32 %v4953_v29, %v2402_v40  ;;  %v2501_v25 = vmul.f32 1.442695, %v2451_v51 }
 0x5c9   :  { %v2414_v37 = vpop.xlane.xlu0 %2413  ;;  %v2493_v36 = vmul.f32 1.442695, %v2447_v4  ;;  %v2456_v29 = vsub.f32 %v4959_v61, %v5069_v27  ;;  %v2505_v40 = vmul.f32 1.442695, %v2453_v45  ;;  %v2455_v61 = vsub.f32 %v4965_v12, %v5071_v33 }
 0x5ca   :  { %4033 = vpow2.f32 %v2497_v11  ;;  %v2507_v28 = vmul.f32 1.442695, %v2454_v44  ;;  %v2458_v8 = vsub.f32 %v4951_v22, %v2414_v37  ;;  %v2462_v4 = vsub.f32 %v4971_v31, %v5073_v2 }
 0x5cb   :  { %4035 = vpow2.f32 %v2491_v6  ;;  %v2511_v49 = vmul.f32 1.442695, %v2456_v29  ;;  %v2509_v12 = vmul.f32 1.442695, %v2455_v61  ;;  %v2461_v44 = vsub.f32 %v4977_v35, %v5075_v24 }
 0x5cc   :  { %4037 = vpow2.f32 %v2503_v10  ;;  %v2515_v46 = vmul.f32 1.442695, %v2458_v8  ;;  %v2464_v35 = vsub.f32 %v4983_v38, %v5077_v48 }
 0x5cd   :  { %4039 = vpow2.f32 %v2477_v63  ;;  %v2411_v26 = vpop.xlane.xlu0 %2410 }
 0x5ce   :  { %4041 = vpow2.f32 %v2489_v55  ;;  %v2457_v22 = vsub.f32 %v4955_v42, %v2411_v26  ;;  %v2460_v42 = vsub.f32 %v4961_v7, %v5086_v50  ;;  %v2459_v7 = vsub.f32 %v4967_v17, %v5094_v62 }
 0x5cf   :  { %4043 = vpow2.f32 %v2495_v18 }
 0x5d0   :  { %4045 = vpow2.f32 %v2501_v25  ;;  %v2513_v15 = vmul.f32 1.442695, %v2457_v22  ;;  %v2519_v20 = vmul.f32 1.442695, %v2460_v42  ;;  %v2517_v37 = vmul.f32 1.442695, %v2459_v7 }
 0x5d1   :  { %4047 = vpow2.f32 %v2493_v36  ;;  %v2523_v36 = vmul.f32 1.442695, %v2462_v4 }
 0x5d2   :  { %4049 = vpow2.f32 %v2507_v28  ;;  %v2521_v28 = vmul.f32 1.442695, %v2461_v44 }
 0x5d3   :  { %v5102_v30 = vpop.eup %4029  ;;  %4051 = vpow2.f32 %v2505_v40  ;;  %v2527_v40 = vmul.f32 1.442695, %v2464_v35 }
 0x5d4   :  { %v5105_v39 = vpop.eup %4031  ;;  %v2580_v23 = vsel %vm920_vm2, %v5102_v30, 0.0  ;;  %4053 = vpow2.f32 %v2515_v46 }
 0x5d5   :  { %2581 = vadd.xlane.f32.xlu1 %v2580_v23  ;;  %v2550_v16 = vsel %vm920_vm2, %v5105_v39, 0.0  ;;  %4055 = vpow2.f32 %v2511_v49 }
 0x5d6   :  { %4057 = vpow2.f32 %v2513_v15 }
 0x5d7   :  { %v5110_v34 = vpop.eup %4033  ;;  %4059 = vpow2.f32 %v2509_v12 }
 0x5d8   :  { %v5116_v19 = vpop.eup %4035  ;;  %v2577_v0 = vsel %vm920_vm2, %v5110_v34, 0.0  ;;  %4061 = vpow2.f32 %v2519_v20 }
 0x5d9   :  { %v5121_v60 = vpop.eup %4037  ;;  %2551 = vadd.xlane.f32.xlu1 %v2550_v16  ;;  %2578 = vadd.xlane.f32.xlu0 %v2577_v0  ;;  %v2568_v27 = vsel %vm920_vm2, %v5116_v19, 0.0  ;;  %4063 = vpow2.f32 %v2517_v37  ;;  %v2463_v16 = vsub.f32 %v4989_v32, %v5079_v9 }
 0x5da   :  { %v5127_v6 = vpop.eup %4039  ;;  %v2586_v10 = vsel %vm920_vm2, %v5121_v60, 0.0  ;;  %4065 = vpow2.f32 %v2523_v36 }
 0x5db   :  { %v5133_v11 = vpop.eup %4041  ;;  %v2547_v33 = vsel %vm920_vm2, %v5127_v6, 0.0  ;;  %4067 = vpow2.f32 %v2521_v28  ;;  %v2525_v22 = vmul.f32 1.442695, %v2463_v16 }
 0x5dc   :  { %v5137_v63 = vpop.eup %4043  ;;  %v2565_v50 = vsel %vm920_vm2, %v5133_v11, 0.0  ;;  %4069 = vpow2.f32 %v2527_v40 }
 0x5dd   :  { %2587 = vadd.xlane.f32.xlu1 %v2586_v10  ;;  %2569 = vadd.xlane.f32.xlu0 %v2568_v27  ;;  %v5143_v55 = vpop.eup %4045  ;;  %v2574_v51 = vsel %vm920_vm2, %v5137_v63, 0.0  ;;  %4071 = vpow2.f32 %v2525_v22 }
 0x5de   :  { %v5147_v18 = vpop.eup %4047  ;;  %v2583_v17 = vsel %vm920_vm2, %v5143_v55, 0.0 }
 0x5df   :  { %v5153_v62 = vpop.eup %4049  ;;  %v2571_v31 = vsel %vm920_vm2, %v5147_v18, 0.0 }
 0x5e0   :  { %v5157_v25 = vpop.eup %4051  ;;  %v2592_v45 = vsel %vm920_vm2, %v5153_v62, 0.0 }
 0x5e1   :  { %2548 = vadd.xlane.f32.xlu1 %v2547_v33  ;;  %2566 = vadd.xlane.f32.xlu0 %v2565_v50  ;;  %v5163_v2 = vpop.eup %4053  ;;  %v2589_v24 = vsel %vm920_vm2, %v5157_v25, 0.0 }
 0x5e2   :  { %v5165_v8 = vpop.eup %4055  ;;  %v2604_v23 = vsel %vm920_vm2, %v5163_v2, 0.0 }
 0x5e3   :  { %v5173_v26 = vpop.eup %4057  ;;  %v2598_v38 = vsel %vm920_vm2, %v5165_v8, 0.0 }
 0x5e4   :  { %v5175_v29 = vpop.eup %4059  ;;  %v2601_v48 = vsel %vm920_vm2, %v5173_v26, 0.0 }
 0x5e5   :  { %2584 = vadd.xlane.f32.xlu1 %v2583_v17  ;;  %2575 = vadd.xlane.f32.xlu0 %v2574_v51  ;;  %v5183_v46 = vpop.eup %4061  ;;  %v2595_v0 = vsel %vm920_vm2, %v5175_v29, 0.0 }
 0x5e6   :  { %v2610_v49 = vsel %vm920_vm2, %v5183_v46, 0.0  ;;  %v5189_v61 = vpop.eup %4063 }
 0x5e7   :  { %v2607_v32 = vsel %vm920_vm2, %v5189_v61, 0.0  ;;  %v5193_v9 = vpop.eup %4065 }
 0x5e8   :  { %v5195_v27 = vpop.eup %4067  ;;  %v2616_v42 = vsel %vm920_vm2, %v5193_v9, 0.0 }
 0x5e9   :  { %2593 = vadd.xlane.f32.xlu1 %v2592_v45  ;;  %2572 = vadd.xlane.f32.xlu0 %v2571_v31  ;;  %v2613_v15 = vsel %vm920_vm2, %v5195_v27, 0.0  ;;  %v5201_v10 = vpop.eup %4069 }
 0x5ea   :  { %v2622_v12 = vsel %vm920_vm2, %v5201_v10, 0.0  ;;  %v5205_v33 = vpop.eup %4071 }
 0x5eb   :  { %v2619_v20 = vsel %vm920_vm2, %v5205_v33, 0.0 }
 0x5ed   :  { %2590 = vadd.xlane.f32.xlu1 %v2589_v24  ;;  %2605 = vadd.xlane.f32.xlu0 %v2604_v23 }
 0x5f1   :  { %2599 = vadd.xlane.f32.xlu1 %v2598_v38  ;;  %2602 = vadd.xlane.f32.xlu0 %v2601_v48 }
 0x5f5   :  { %2596 = vadd.xlane.f32.xlu1 %v2595_v0  ;;  %2611 = vadd.xlane.f32.xlu0 %v2610_v49 }
 0x5f9   :  { %2608 = vadd.xlane.f32.xlu0 %v2607_v32 }
 0x5fd   :  { %2617 = vadd.xlane.f32.xlu0 %v2616_v42 }
 0x601   :  { %2614 = vadd.xlane.f32.xlu0 %v2613_v15 }
 0x603   :  { %v2534_v7 = vpop.xlane.xlu1 %2533 }
 0x605   :  { %2623 = vadd.xlane.f32.xlu0 %v2622_v12 }
 0x606   :  { %2787 = vrot.lane.b32.xlu1 %v4767_v57, %s4160_s15 }
 0x607   :  { %v2531_v50 = vpop.xlane.xlu1 %2530 }
 0x609   :  { %2620 = vadd.xlane.f32.xlu0 %v2619_v20 }
 0x60a   :  { %2983 = vrot.lane.b32.xlu1 %v5418_v5, %s4160_s15 }
 0x60b   :  { %v2540_v51 = vpop.xlane.xlu1 %2539 }
 0x60e   :  { %2885 = vrot.lane.b32.xlu1 %v4809_v21, %s4160_s15 }
 0x60f   :  { %v2537_v37 = vpop.xlane.xlu1 %2536 }
 0x613   :  { %v2546_v57 = vpop.xlane.xlu1 %2545 }
 0x617   :  { %v2558_v4 = vpop.xlane.xlu0 %2557  ;;  %v2543_v36 = vpop.xlane.xlu1 %2542 }
 0x61b   :  { %v5217_v17 = vpop.xlane.xlu0 %2554 }
 0x61f   :  { %2689 = vrot.lane.b32.xlu0 %v4733_v3, %s4160_s15  ;;  %v2564_v44 = vpop.xlane.xlu0 %2563 }
 0x623   :  { %v2561_v45 = vpop.xlane.xlu0 %2560 }
 0x65e   :  { %v5219_v31 = vpop.xlane.xlu1 %2581 }
 0x662   :  { %v2552_v5 = vpop.xlane.xlu1 %2551  ;;  %v5221_v28 = vpop.xlane.xlu0 %2578 }
 0x663   :  { %4073 = vrcp.f32 %v2552_v5 }
 0x666   :  { %v5223_v21 = vpop.xlane.xlu1 %2587  ;;  %v2570_v3 = vpop.xlane.xlu0 %2569 }
 0x66a   :  { %v2549_v35 = vpop.xlane.xlu1 %2548  ;;  %v2567_v24 = vpop.xlane.xlu0 %2566 }
 0x66b   :  { %4075 = vrcp.f32 %v2549_v35 }
 0x66c   :  { %4077 = vrcp.f32 %v2546_v57 }
 0x66e   :  { %v2576_v23 = vpop.xlane.xlu0 %2575  ;;  %v5225_v40 = vpop.xlane.xlu1 %2584 }
 0x66f   :  { %4079 = vrcp.f32 %v2576_v23 }
 0x670   :  { %v4074_v16 = vpop.eup %4073  ;;  %4081 = vrcp.f32 %v2543_v36 }
 0x671   :  { %v2664_v38 = vmul.f32 %v4074_v16, %v5105_v39 }
 0x672   :  { %v2573_v48 = vpop.xlane.xlu0 %2572  ;;  %v2594_v22 = vpop.xlane.xlu1 %2593 }
 0x673   :  { %3781 = vmatpush3.xpose.msk.msra.mxu0 %vm920_vm2, %v2664_v38  ;;  %4083 = vrcp.f32 %v2573_v48 }
 0x674   :  { %3782 = vmatprep.subr.mxu0 %v5411_v14  ;;  %4085 = vrcp.f32 %v2540_v51 }
 0x675   :  { %4087 = vrcp.f32 %v2570_v3 }
 0x676   :  { %v5230_v0 = vpop.xlane.xlu0 %2605  ;;  %4089 = vrcp.f32 %v2537_v37  ;;  %v2591_v39 = vpop.xlane.xlu1 %2590 }
 0x677   :  { %4091 = vrcp.f32 %v2567_v24 }
 0x678   :  { %v4076_v49 = vpop.eup %4075  ;;  %4093 = vrcp.f32 %v2534_v7 }
 0x679   :  { %v2663_v32 = vmul.f32 %v4076_v49, %v5127_v6  ;;  %v4078_v42 = vpop.eup %4077  ;;  %4095 = vrcp.f32 %v2564_v44 }
 0x67a   :  { %v5233_v15 = vpop.xlane.xlu0 %2602  ;;  %v2662_v20 = vmul.f32 %v4078_v42, %v5045_v59  ;;  %4097 = vrcp.f32 %v2531_v50  ;;  %v2600_v36 = vpop.xlane.xlu1 %2599 }
 0x67b   :  { %3783 = vmatpush3.xpose.msk.msra.mxu0 %vm920_vm2, %v2663_v32  ;;  %4099 = vrcp.f32 %v2561_v45 }
 0x67c   :  { %3784 = vmatprep.subr.mxu0 %v5411_v14  ;;  %v4080_v12 = vpop.eup %4079  ;;  %4101 = vrcp.f32 %v2558_v4 }
 0x67d   :  { %v4082_v51 = vpop.eup %4081  ;;  %v2672_v37 = vmul.f32 %v4080_v12, %v5137_v63  ;;  %4103 = vrcp.f32 %v2600_v36 }
 0x67e   :  { %v5238_v57 = vpop.xlane.xlu0 %2611  ;;  %v2661_v7 = vmul.f32 %v4082_v51, %v5049_v54  ;;  %v2597_v24 = vpop.xlane.xlu1 %2596  ;;  %4105 = vrcp.f32 %v5217_v17 }
 0x67f   :  { %3785 = vmatpush3.xpose.msk.msra.mxu0 %vm920_vm2, %v2662_v20  ;;  %3800 = vmatpush3.xpose.msk.msra.mxu1 %vm920_vm2, %v2672_v37  ;;  %4107 = vrcp.f32 %v2597_v24 }
 0x680   :  { %3786 = vmatprep.subr.mxu0 %v5411_v14  ;;  %v4084_v6 = vpop.eup %4083  ;;  %3801 = vmatprep.subr.mxu1 %v5411_v14  ;;  %4109 = vrcp.f32 %v2594_v22 }
 0x681   :  { %v4086_v59 = vpop.eup %4085  ;;  %v2671_v5 = vmul.f32 %v4084_v6, %v5147_v18 }
 0x682   :  { %v5246_v44 = vpop.xlane.xlu0 %2608  ;;  %v4088_v63 = vpop.eup %4087  ;;  %v2660_v50 = vmul.f32 %v4086_v59, %v5035_v47 }
 0x683   :  { %3787 = vmatpush3.xpose.msk.msra.mxu0 %vm920_vm2, %v2661_v7  ;;  %3802 = vmatpush3.xpose.msk.msra.mxu1 %vm920_vm2, %v2671_v5  ;;  %v4090_v3 = vpop.eup %4089  ;;  %v2670_v45 = vmul.f32 %v4088_v63, %v5116_v19 }
 0x684   :  { %3788 = vmatprep.subr.mxu0 %v5411_v14  ;;  %3803 = vmatprep.subr.mxu1 %v5411_v14  ;;  %v4092_v35 = vpop.eup %4091  ;;  %v2659_v18 = vmul.f32 %v4090_v3, %v5041_v53 }
 0x685   :  { %v4094_v47 = vpop.eup %4093  ;;  %v2669_v23 = vmul.f32 %v4092_v35, %v5133_v11  ;;  %v3101_v35 = vld [vmem:[%s5392_s3] sm:$0xff] }
 0x686   :  { %v2618_v54 = vpop.xlane.xlu0 %2617  ;;  %v4096_v19 = vpop.eup %4095  ;;  %v2658_v17 = vmul.f32 %v4094_v47, %v5025_v13  ;;  %v3106_v47 = vld [vmem:[%s5393_s4 + $0x8] sm:$0xff] }
 0x687   :  { %3789 = vmatpush3.xpose.msk.msra.mxu0 %vm920_vm2, %v2660_v50  ;;  %3804 = vmatpush3.xpose.msk.msra.mxu1 %vm920_vm2, %v2670_v45  ;;  %v4098_v16 = vpop.eup %4097  ;;  %v2668_v53 = vmul.f32 %v4096_v19, %v5061_v58 }
 0x688   :  { %3790 = vmatprep.subr.mxu0 %v5411_v14  ;;  %3805 = vmatprep.subr.mxu1 %v5411_v14  ;;  %v4100_v48 = vpop.eup %4099  ;;  %v2657_v11 = vmul.f32 %v4098_v16, %v5030_v41 }
 0x689   :  { %v4102_v49 = vpop.eup %4101  ;;  %v2667_v22 = vmul.f32 %v4100_v48, %v5065_v1  ;;  %v5424_v48 = vld [vmem:[#allocation6_spill] sm:$0xff] }
 0x68a   :  { %v2615_v4 = vpop.xlane.xlu0 %2614  ;;  %v4104_v32 = vpop.eup %4103  ;;  %v2666_v42 = vmul.f32 %v4102_v49, %v5051_v52 }
 0x68b   :  { %3791 = vmatpush3.xpose.msk.msra.mxu0 %vm920_vm2, %v2659_v18  ;;  %3806 = vmatpush3.xpose.msk.msra.mxu1 %vm920_vm2, %v2669_v23  ;;  %v4106_v58 = vpop.eup %4105 }
 0x68c   :  { %3792 = vmatprep.subr.mxu0 %v5411_v14  ;;  %3807 = vmatprep.subr.mxu1 %v5411_v14  ;;  %v4108_v1 = vpop.eup %4107 }
 0x68d   :  { %v2679_v52 = vmul.f32 %v4108_v1, %v5175_v29 }
 0x68e   :  { %v2624_v38 = vpop.xlane.xlu0 %2623 }
 0x68f   :  { %4111 = vrcp.f32 %v2624_v38  ;;  %3793 = vmatpush3.xpose.msk.msra.mxu0 %vm920_vm2, %v2658_v17  ;;  %3808 = vmatpush3.xpose.msk.msra.mxu1 %vm920_vm2, %v2668_v53  ;;  %v5423_v38 = vld [vmem:[#allocation8_spill] sm:$0xff] }
 0x690   :  { %3794 = vmatprep.subr.mxu0 %v5411_v14  ;;  %3809 = vmatprep.subr.mxu1 %v5411_v14  ;;  %4113 = vrcp.f32 %v2591_v39  ;;  %v2680_v39 = vmul.f32 %v4104_v32, %v5165_v8  ;;  %v4110_v8 = vpop.eup %4109  ;;  %v3103_v32 = vld [vmem:[%s5392_s3 + $0x10] sm:$0xff] }
 0x691   :  { %v2678_v29 = vmul.f32 %v4110_v8, %v5153_v62 }
 0x692   :  { %v2621_v13 = vpop.xlane.xlu0 %2620 }
 0x693   :  { %4115 = vrcp.f32 %v2621_v13  ;;  %3795 = vmatpush3.xpose.msk.msra.mxu0 %vm920_vm2, %v2657_v11  ;;  %3810 = vmatpush3.xpose.msk.msra.mxu1 %vm920_vm2, %v2667_v22  ;;  %v5425_v13 = vld [vmem:[#allocation12_spill] sm:$0xff] }
 0x694   :  { %3818 = vmatprep.subr.mxu0 %v5411_v14  ;;  %4117 = vrcp.f32 %v5223_v21  ;;  %3811 = vmatprep.subr.mxu1 %v5411_v14  ;;  %v2665_v21 = vmul.f32 %v4106_v58, %v5057_v43  ;;  %v2788_v43 = vpop.permute.xlu1 %2787  ;;  %v3104_v58 = vld [vmem:[%s5392_s3 + $0x18] sm:$0xff] }
 0x695   :  { %4119 = vrcp.f32 %v2618_v54 }
 0x696   :  { %v2690_v41 = vpop.permute.xlu0 %2689  ;;  %4121 = vrcp.f32 %v5225_v40 }
 0x697   :  { %3797 = vmatmul.mubr.msk.f32.vlgmr.msra.gmra.mxu0 %vm920_vm2, %v2690_v41  ;;  %3812 = vmatpush3.xpose.msk.msra.mxu1 %vm920_vm2, %v2666_v42  ;;  %4123 = vrcp.f32 %v2615_v4  ;;  %v3108_v4 = vld [vmem:[%s5393_s4 + $0x18] sm:$0xff] }
 0x698   :  { %3819 = vmatpush3.xpose.msk.msra.mxu0 %vm920_vm2, %v2680_v39  ;;  %3813 = vmatprep.subr.mxu1 %v5411_v14  ;;  %4125 = vrcp.f32 %v5219_v31 }
 0x699   :  { %3820 = vmatprep.subr.mxu0 %v5411_v14  ;;  %3834 = vmatprep.mubr.msk.f32.mxu0 %vm4162_vm3, %v5411_v14  ;;  %4127 = vrcp.f32 %v5238_v57 }
 0x69a   :  { %4129 = vrcp.f32 %v5221_v28 }
 0x69b   :  { %3814 = vmatpush3.xpose.msk.msra.mxu1 %vm920_vm2, %v2665_v21  ;;  %4131 = vrcp.f32 %v5246_v44 }
 0x69c   :  { %v4112_v12 = vpop.eup %4111  ;;  %3821 = vmatpush3.xpose.msk.msra.mxu0 %vm920_vm2, %v2679_v52  ;;  %3837 = vmatprep.subr.mxu1 %v5411_v14  ;;  %4133 = vrcp.f32 %v5230_v0 }
 0x69d   :  { %3822 = vmatprep.subr.mxu0 %v5411_v14  ;;  %v2688_v40 = vmul.f32 %v4112_v12, %v5201_v10  ;;  %v4114_v20 = vpop.eup %4113  ;;  %4135 = vrcp.f32 %v5233_v15  ;;  %v2984_v15 = vpop.permute.xlu1 %2983 }
 0x69e   :  { %3816 = vmatmul.mubr.msk.f32.vlgmr.msra.gmra.mxu1 %vm920_vm2, %v2788_v43  ;;  %v2677_v62 = vmul.f32 %v4114_v20, %v5157_v25 }
 0x69f   :  { %3838 = vmatpush3.xpose.msk.msra.mxu1 %vm920_vm2, %v2688_v40  ;;  %3853 = vmatprep.mubr.msk.f32.mxu1 %vm4162_vm3, %v5411_v14 }
 0x6a0   :  { %v4116_v51 = vpop.eup %4115  ;;  %3823 = vmatpush3.xpose.msk.msra.mxu0 %vm920_vm2, %v2678_v29  ;;  %3839 = vmatprep.subr.mxu1 %v5411_v14 }
 0x6a1   :  { %3824 = vmatprep.subr.mxu0 %v5411_v14  ;;  %v2687_v10 = vmul.f32 %v4116_v51, %v5205_v33  ;;  %v4118_v31 = vpop.eup %4117 }
 0x6a2   :  { %v4120_v57 = vpop.eup %4119  ;;  %v2676_v33 = vmul.f32 %v4118_v31, %v5121_v60 }
 0x6a3   :  { %3840 = vmatpush3.xpose.msk.msra.mxu1 %vm920_vm2, %v2687_v10  ;;  %v4122_v28 = vpop.eup %4121  ;;  %v2686_v37 = vmul.f32 %v4120_v57, %v5193_v9 }
 0x6a4   :  { %3825 = vmatpush3.xpose.msk.msra.mxu0 %vm920_vm2, %v2677_v62  ;;  %3841 = vmatprep.subr.mxu1 %v5411_v14  ;;  %v4124_v25 = vpop.eup %4123  ;;  %v2675_v36 = vmul.f32 %v4122_v28, %v5143_v55 }
 0x6a5   :  { %3826 = vmatprep.subr.mxu0 %v5411_v14  ;;  %v4126_v6 = vpop.eup %4125  ;;  %v2685_v0 = vmul.f32 %v4124_v25, %v5195_v27 }
 0x6a6   :  { %v4128_v7 = vpop.eup %4127  ;;  %v2674_v9 = vmul.f32 %v4126_v6, %v5102_v30  ;;  %v2886_v30 = vpop.permute.xlu1 %2885 }
 0x6a7   :  { %3842 = vmatpush3.xpose.msk.msra.mxu1 %vm920_vm2, %v2686_v37  ;;  %v4130_v60 = vpop.eup %4129  ;;  %v2684_v59 = vmul.f32 %v4128_v7, %v5183_v46 }
 0x6a8   :  { %3827 = vmatpush3.xpose.msk.msra.mxu0 %vm920_vm2, %v2676_v33  ;;  %3843 = vmatprep.subr.mxu1 %v5411_v14  ;;  %v4132_v44 = vpop.eup %4131  ;;  %v2673_v55 = vmul.f32 %v4130_v60, %v5110_v34 }
 0x6a9   :  { %3828 = vmatprep.subr.mxu0 %v5411_v14  ;;  %v2683_v27 = vmul.f32 %v4132_v44, %v5189_v61  ;;  %v4134_v5 = vpop.eup %4133 }
 0x6aa   :  { %v2682_v46 = vmul.f32 %v4134_v5, %v5163_v2  ;;  %v4136_v63 = vpop.eup %4135  ;;  %v3105_v2 = vld [vmem:[%s5393_s4] sm:$0xff] }
 0x6ab   :  { %3844 = vmatpush3.xpose.msk.msra.mxu1 %vm920_vm2, %v2685_v0  ;;  %v2681_v34 = vmul.f32 %v4136_v63, %v5173_v26 }
 0x6ac   :  { %3829 = vmatpush3.xpose.msk.msra.mxu0 %vm920_vm2, %v2675_v36  ;;  %3845 = vmatprep.subr.mxu1 %v5411_v14 }
 0x6ad   :  { %3830 = vmatprep.subr.mxu0 %v5411_v14 }
 0x6af   :  { %3846 = vmatpush3.xpose.msk.msra.mxu1 %vm920_vm2, %v2684_v59 }
 0x6b0   :  { %3831 = vmatpush3.xpose.msk.msra.mxu0 %vm920_vm2, %v2674_v9  ;;  %3847 = vmatprep.subr.mxu1 %v5411_v14 }
 0x6b1   :  { %3832 = vmatprep.subr.mxu0 %v5411_v14 }
 0x6b3   :  { %3848 = vmatpush3.xpose.msk.msra.mxu1 %vm920_vm2, %v2683_v27 }
 0x6b4   :  { %3833 = vmatpush3.xpose.msk.msra.mxu0 %vm920_vm2, %v2673_v55  ;;  %3849 = vmatprep.subr.mxu1 %v5411_v14 }
 0x6b7   :  { %3835 = vmatmul.mubr.msk.f32.vlgmr.msra.gmra.mxu0 %vm920_vm2, %v2886_v30  ;;  %3850 = vmatpush3.xpose.msk.msra.mxu1 %vm920_vm2, %v2682_v46 }
 0x6b8   :  { %3851 = vmatprep.subr.mxu1 %v5411_v14  ;;  %v3107_v14 = vld [vmem:[%s5393_s4 + $0x10] sm:$0xff]  ;;  %3864 = vmatprep.mubr.msk.f32.mxu0 %vm109_vm0, %v3101_v35 }
 0x6bb   :  { %3852 = vmatpush3.xpose.msk.msra.mxu1 %vm920_vm2, %v2681_v34 }
 0x6be   :  { %3854 = vmatmul.mubr.msk.f32.vlgmr.msra.gmra.mxu1 %vm920_vm2, %v2984_v15 }
 0x757   :  { %v2783_v61 = vpop.f32.mrf.mxu0 }
 0x759   :  { %v3798_v50 = vpop.f32.mrf.mxu0 }
 0x75e   :  { %v2881_v3 = vpop.f32.mrf.mxu1 }
 0x75f   :  { %3087 = vrot.lane.b32.xlu0 %v2881_v3, %s4160_s15 }
 0x760   :  { %v3817_v54 = vpop.f32.mrf.mxu1 }
 0x763   :  { %3111 = vperm.xlu0 %3879, %v3105_v2  }
 0x767   :  { %3121 = vperm.xlu0 %3879, %v3107_v14  }
 0x777   :  { %v2979_v26 = vpop.f32.mrf.mxu0 }
 0x779   :  { %v3836_v45 = vpop.f32.mrf.mxu0 }
 0x77e   :  { %v3077_v24 = vpop.f32.mrf.mxu1 }
 0x77f   :  { %3091 = vrot.lane.b32.xlu1 %v3077_v24, %s4160_s15 }
 0x780   :  { %v3855_v18 = vpop.f32.mrf.mxu1 }
 0x783   :  { %3089 = vrot.lane.b32.xlu1 %v2979_v26, %s4160_s15 }
 0x787   :  { %3085 = vrot.lane.b32.xlu1 %v2783_v61, %s4160_s15 }
 0x78b   :  { %3116 = vperm.xlu1 %3880, %v3106_v47  }
 0x78f   :  { %3126 = vperm.xlu1 %3880, %v3108_v4  }
 0x7d1   :  { %v3088_v17 = vpop.permute.xlu0 %3087 }
 0x7d2   :  { %v3098_v11 = vsel %vm920_vm2, %v5424_v48, %v3088_v17 }
 0x7de   :  { %v3112_v42 = vpop.permute.xlu0 %3111 }
 0x7e2   :  { %v3122_v43 = vpop.permute.xlu0 %3121 }
 0x7f1   :  { %v3092_v23 = vpop.permute.xlu1 %3091 }
 0x7f2   :  { %v3100_v19 = vsel %vm920_vm2, %v4885_v56, %v3092_v23  ;;  %v3102_v56 = vld [vmem:[%s5392_s3 + $0x8] sm:$0xff]  ;;  %s4137_s3 = scalar_lea.vmem %s3236_s11, 512 }
 0x7f3   :  { %3856 = vmatprep.subr.mxu0 %v3100_v19  ;;  %p4138_p0 = scmp.ne.s32.totalorder %s3236_s11, %s4137_s3  ;;  %p4143_p2 = scmp.lt.s32.totalorder %s4137_s3, %s4137_s3 }
 0x7f4   :  { %3857 = vmatpush3.msra.mxu0 %v3100_v19 }
 0x7f5   :  { %v3090_v16 = vpop.permute.xlu1 %3089  ;;  %p4144_p3 = por %p4143_p2, %p4142_p1 }
 0x7f6   :  { %v3099_v53 = vsel %vm920_vm2, %v5423_v38, %v3090_v16 }
 0x7f7   :  { %3858 = vmatprep.subr.mxu0 %v3099_v53  ;;  %p4145_p4 = pnand %p4144_p3, %p4138_p0 }
 0x7f8   :  { %3859 = vmatpush3.msra.mxu0 %v3099_v53 }
 0x7f9   :  { %v3086_v49 = vpop.permute.xlu1 %3085  ;;  %3860 = vmatprep.subr.mxu0 %v3098_v11 }
 0x7fa   :  { %3861 = vmatpush3.msra.mxu0 %v3098_v11  ;;  %v3097_v22 = vsel %vm920_vm2, %v5425_v13, %v3086_v49 }
 0x7fb   :  { %3862 = vmatprep.subr.mxu0 %v3097_v22 }
 0x7fc   :  { %3863 = vmatpush3.msra.mxu0 %v3097_v22 }
 0x7fd   :  { %3865 = vmatmul.mubr.msk.f32.vlgmr.msra.gmra.mxu0 %vm109_vm0, %v3102_v56 }
 0x7fe   :  { %3867 = vmatprep.mubr.msk.f32.mxu0 %vm109_vm0, %v3103_v32 }
 0x801   :  { %3868 = vmatmul.mubr.msk.f32.gmra.mxu0 %vm109_vm0, %v3104_v58 }
 0x806   :  { %v3117_v41 = vpop.permute.xlu1 %3116 }
 0x80a   :  { %v3127_v8 = vpop.permute.xlu1 %3126 }
 0x8bd   :  { %v3866_v39 = vpop.f32.mrf.mxu0 }
 0x8be   :  { %v3213_v1 = vadd.f32 %v3866_v39, %v3117_v41 }
 0x8bf   :  { %v3207_v21 = vpop.f32.mrf.mxu0 }
 0x8c0   :  { %3227 = vst [vmem:[#allocation2 + $0x8] sm:$0xff] %v3213_v1  ;;  %v3208_v52 = vadd.f32 %v3207_v21, %v3112_v42 }
 0x8c1   :  { %v3869_v12 = vpop.f32.mrf.mxu0 }
 0x8c2   :  { %3226 = vst [vmem:[#allocation2] sm:$0xff] %v3208_v52  ;;  %v3223_v40 = vadd.f32 %v3869_v12, %v3127_v8 }
 0x8c3   :  { %v3217_v29 = vpop.f32.mrf.mxu0 }
 0x8c4   :  { %3229 = vst [vmem:[#allocation2 + $0x18] sm:$0xff] %v3223_v40  ;;  %v3218_v20 = vadd.f32 %v3217_v29, %v3122_v43 }
 0x8c6   :  { %3228 = vst [vmem:[#allocation2 + $0x10] sm:$0xff] %v3218_v20 }
 0x8c7   :  { %4148 = shalt.err (!%p4145_p4)
}
 0x8c8   :  { %s4164_s1 = smov 128   ;;  %s4165_s12 = smov 8  }
 0x8c9   :  { %3241 = dma.vmem_to_hbm [thread:$0]  %s3236_s11, 512, %s5394_s5, [#allocation3], %s4164_s1, %s4164_s1, %s4165_s12  }
 0x8ca   :  { %4157 = dma.done.wait [#allocation3], 512  }
 0x8cb   :  { %4158 = vsyncadd [#allocation3], 4294966784 }
 0x8cc   :  { %3245 = vsyncpa [#allocation3], 1 }

</bundles_post_ra>
